<compile_context>
chip_gen: v7x
topology: tpu7x:2x2x1
jax: 0.10.0
libtpu: 0.0.40
codegen_flags: <defaults>
</compile_context>

<pallas_src>
import math

import jax
import jax.numpy as jnp
from jax import lax
from jax.experimental import pallas as pl
from jax.experimental.pallas import tpu as pltpu

# ----------------------------- model config ---------------------------------
VOCAB = 100
MAX_POS = 16
HIDDEN = 32          # H
NUM_HEADS = 2
HEAD_DIM = HIDDEN // NUM_HEADS
FFN = 64             # intermediate size
NUM_LAYERS = 2
BATCH = 2
SEQ = 8
LN_EPS = 1e-12
NUM_TOWERS = 2       # {query, doc}

ROWS = NUM_TOWERS * BATCH * SEQ     # 32 activation rows, ordered (tower, b, s)
HROWS = NUM_HEADS * ROWS            # 64 head-merged attention rows (head major)

# Row layout of the packed "vecs" tensor (all H-wide vectors stacked):
#   row 0: embedding LayerNorm gamma
#   row 1: embedding LayerNorm beta
#   rows 2 + 6*l .. 2 + 6*l + 5 : [bo, ln1_g, ln1_b, bf2, ln2_g, ln2_b] of layer l
_VEC_EMB_G = 0
_VEC_EMB_B = 1
_VEC_BASE = 2
_VEC_PER_LAYER = 6


# ----------------------------- kernel helpers --------------------------------
def _layer_norm(h, g, b):
    mu = jnp.mean(h, axis=-1, keepdims=True)
    var = jnp.mean(jnp.square(h - mu), axis=-1, keepdims=True)
    return (h - mu) * lax.rsqrt(var + LN_EPS) * g + b


def _gelu(x):
    # TODO(synk): PyTorch F.gelu default is exact erf-GELU; the tanh approximation
    # is used for guaranteed Mosaic lowering of the transcendental (~1e-3 dev).
    c = 0.7978845608028654  # sqrt(2/pi)
    return 0.5 * x * (1.0 + jnp.tanh(c * (x + 0.044715 * x * x * x)))


# ----------------------------- fused dual-encoder kernel ---------------------
def encoder_kernel(ids_ref, neg_ref, wemb_ref, pemb_ref,
                   wqkv_ref, bqkv_ref, wo_ref,
                   wf1_ref, bf1_ref, wf2_ref, vecs_ref,
                   scores_ref):
    f32 = jnp.float32

    # --- embeddings: one-hot gathers run on the MXU (no separate XLA gather) ---
    ids = ids_ref[...]                                               # (ROWS, 1) i32
    tok_oh = (ids == lax.broadcasted_iota(jnp.int32, (ROWS, VOCAB), 1)).astype(f32)
    x = jnp.dot(tok_oh, wemb_ref[...], preferred_element_type=f32)   # (ROWS, H)

    pos = lax.broadcasted_iota(jnp.int32, (ROWS, 1), 0) % SEQ        # row -> seq pos
    pos_oh = (pos == lax.broadcasted_iota(jnp.int32, (ROWS, MAX_POS), 1)).astype(f32)
    x = x + jnp.dot(pos_oh, pemb_ref[...], preferred_element_type=f32)

    h = _layer_norm(x, vecs_ref[_VEC_EMB_G], vecs_ref[_VEC_EMB_B])   # (ROWS, H)

    # Additive mask for the head/tower/batch-merged score matrix (prebuilt):
    # block-diagonal (rows attend only within their own sequence) + key padding.
    neg = neg_ref[...]                                               # (HROWS, HROWS)
    scale = 1.0 / math.sqrt(HEAD_DIM)

    for l in range(NUM_LAYERS):        # static unroll over layers
        base = _VEC_BASE + l * _VEC_PER_LAYER
        bo = vecs_ref[base + 0]
        ln1_g = vecs_ref[base + 1]
        ln1_b = vecs_ref[base + 2]
        bf2 = vecs_ref[base + 3]
        ln2_g = vecs_ref[base + 4]
        ln2_b = vecs_ref[base + 5]

        # Fused QKV projection: one (ROWS, H) @ (H, 3H) matmul + one bias add.
        qkv = (jnp.dot(h, wqkv_ref[l], preferred_element_type=f32)
               + bqkv_ref[l])                                        # (ROWS, 3H)

        # Merge (head, tower, batch, seq) into the row axis -> (HROWS, HEAD_DIM).
        def heads(off):
            return jnp.concatenate(
                [qkv[:, off + hd * HEAD_DIM: off + (hd + 1) * HEAD_DIM]
                 for hd in range(NUM_HEADS)], axis=0)

        qh, kh, vh = heads(0), heads(HIDDEN), heads(2 * HIDDEN)

        # Single block-masked score matmul (NT contraction, no explicit transpose)
        # and single PV matmul per layer.
        s = lax.dot_general(qh, kh, (((1,), (1,)), ((), ())),
                            preferred_element_type=f32) * scale + neg
        s = s - jnp.max(s, axis=-1, keepdims=True)
        p = jnp.exp(s)
        p = p * pl.reciprocal(jnp.sum(p, axis=-1, keepdims=True), approx=True)
        ctx = jnp.dot(p, vh, preferred_element_type=f32)             # (HROWS, HD)

        # Output projection accumulated per head (no lane-axis concatenate):
        #   concat_h(ctx_h) @ Wo  ==  sum_h ctx_h @ Wo[h*HD:(h+1)*HD, :]
        attn = bo
        for hd in range(NUM_HEADS):
            attn = attn + jnp.dot(ctx[hd * ROWS:(hd + 1) * ROWS], wo_ref[l, hd],
                                  preferred_element_type=f32)
        h = _layer_norm(attn + h, ln1_g, ln1_b)

        # Feed-forward (flat (ROWS, H) layout throughout).
        ff = _gelu(jnp.dot(h, wf1_ref[l], preferred_element_type=f32)
                   + bf1_ref[l])
        ff = jnp.dot(ff, wf2_ref[l], preferred_element_type=f32) + bf2
        h = _layer_norm(ff + h, ln2_g, ln2_b)

    # last_hidden_state[:, 0, :] for both towers, then scores = q_cls @ d_cls.T
    cls = h.reshape(NUM_TOWERS * BATCH, SEQ, HIDDEN)[:, 0, :]        # (2B, H)
    q_cls = cls[0:BATCH]
    d_cls = cls[BATCH:2 * BATCH]
    scores_ref[...] = lax.dot_general(q_cls, d_cls, (((1,), (1,)), ((), ())),
                                      preferred_element_type=f32)


# ----------------------------- wrappers ---------------------------------------
def _spec_full(shape):
    n = len(shape)
    return pl.BlockSpec(tuple(shape), lambda i, _n=n: (0,) * _n)


def _pack_params(params):
    """Repack parameters into few kernel inputs (fewer DMA descriptors)."""
    L, H = NUM_LAYERS, HIDDEN
    wqkv = jnp.concatenate([params["wq"], params["wk"], params["wv"]], axis=-1)
    bqkv = jnp.concatenate([params["bq"], params["bk"], params["bv"]], axis=-1)
    wo = params["wo"].reshape(L, NUM_HEADS, HEAD_DIM, H)   # Wo rows split by head
    per_layer = jnp.stack([params["bo"], params["ln1_g"], params["ln1_b"],
                           params["bf2"], params["ln2_g"], params["ln2_b"]],
                          axis=1).reshape(L * _VEC_PER_LAYER, H)
    vecs = jnp.concatenate([params["emb_ln_g"][None],
                            params["emb_ln_b"][None],
                            per_layer], axis=0)            # (2 + 6L, H)
    return (params["word_emb"], params["pos_emb"], wqkv, bqkv, wo,
            params["wf1"], params["bf1"], params["wf2"], vecs)


@jax.jit
def dual_encoder_forward(params, q_ids, q_mask, d_ids, d_mask):
    """Both encoders share the same pretrained weights, so query and doc batches
    are folded into the row axis and the whole forward is one pallas_call."""
    B, S = q_ids.shape

    # Token ids flattened in (tower, b, s) order -> (ROWS, 1) for one-hot lookup.
    ids = jnp.concatenate([q_ids, d_ids], axis=0).reshape(ROWS, 1).astype(jnp.int32)

    # Additive attention mask for the (head, tower, batch)-merged score matrix:
    # static block-diagonal (each sequence only sees itself) + key-padding mask.
    key_mask = jnp.concatenate([q_mask, d_mask], axis=0).astype(jnp.float32)
    key_neg = jnp.tile((1.0 - key_mask.reshape(1, ROWS)) * (-1e9), (1, NUM_HEADS))
    grp_r = jnp.arange(HROWS)[:, None] // SEQ
    grp_c = jnp.arange(HROWS)[None, :] // SEQ
    neg = jnp.where(grp_r == grp_c, 0.0, -1e9) + key_neg             # (HROWS, HROWS)

    weights = _pack_params(params)
    inputs = (ids, neg) + weights

    return pl.pallas_call(
        encoder_kernel,
        grid=(1,),                                    # single fused grid step
        in_specs=[_spec_full(a.shape) for a in inputs],
        out_specs=_spec_full((B, B)),
        out_shape=jax.ShapeDtypeStruct((B, B), jnp.float32),
        compiler_params=pltpu.CompilerParams(
            dimension_semantics=("arbitrary",)),
    )(*inputs)


# ----------------------------- parameter init ---------------------------------
def init_params(key):
    ks = jax.random.split(key, 10)

    def w(k, shape):
        return jax.random.normal(k, shape, jnp.float32) * 0.02

    L, H, F = NUM_LAYERS, HIDDEN, FFN
    return {
        "word_emb": w(ks[0], (VOCAB, H)),
        "pos_emb": w(ks[1], (MAX_POS, H)),
        "emb_ln_g": jnp.ones((H,), jnp.float32),
        "emb_ln_b": jnp.zeros((H,), jnp.float32),
        "wq": w(ks[2], (L, H, H)), "bq": jnp.zeros((L, H), jnp.float32),
        "wk": w(ks[3], (L, H, H)), "bk": jnp.zeros((L, H), jnp.float32),
        "wv": w(ks[4], (L, H, H)), "bv": jnp.zeros((L, H), jnp.float32),
        "wo": w(ks[5], (L, H, H)), "bo": jnp.zeros((L, H), jnp.float32),
        "ln1_g": jnp.ones((L, H), jnp.float32),
        "ln1_b": jnp.zeros((L, H), jnp.float32),
        "wf1": w(ks[6], (L, H, F)), "bf1": jnp.zeros((L, F), jnp.float32),
        "wf2": w(ks[7], (L, F, H)), "bf2": jnp.zeros((L, H), jnp.float32),
        "ln2_g": jnp.ones((L, H), jnp.float32),
        "ln2_b": jnp.zeros((L, H), jnp.float32),
    }


# ----------------------------- main --------------------------------------------
if __name__ == "__main__":
    key = jax.random.PRNGKey(0)
    kp, kq, kd = jax.random.split(key, 3)

    params = init_params(kp)

    # query_inputs / doc_inputs: input_ids + attention_mask (token_type_ids would
    # be popped for DistilBERT, so it is simply not modeled here).
    q_ids = jax.random.randint(kq, (BATCH, SEQ), 0, VOCAB, dtype=jnp.int32)
    d_ids = jax.random.randint(kd, (BATCH, SEQ), 0, VOCAB, dtype=jnp.int32)
    q_mask = jnp.ones((BATCH, SEQ), jnp.float32)
    d_mask = jnp.ones((BATCH, SEQ), jnp.float32)

    scores = dual_encoder_forward(params, q_ids, q_mask, d_ids, d_mask)
    scores = jax.block_until_ready(scores)

    assert scores.shape == (BATCH, BATCH)
    assert bool(jnp.all(jnp.isfinite(scores)))
    print("KERNEL_OK")
</pallas_src>

<mosaic_0001>
module attributes {stable_mosaic.version = 11 : i64} {
  func.func @encoder_kernel(%arg0: i32, %arg1: memref<32x1xi32, #tpu.memory_space<vmem>>, %arg2: memref<64x64xf32, #tpu.memory_space<vmem>>, %arg3: memref<100x32xf32, #tpu.memory_space<vmem>>, %arg4: memref<16x32xf32, #tpu.memory_space<vmem>>, %arg5: memref<2x32x96xf32, #tpu.memory_space<vmem>>, %arg6: memref<2x96xf32, #tpu.memory_space<vmem>>, %arg7: memref<2x2x16x32xf32, #tpu.memory_space<vmem>>, %arg8: memref<2x32x64xf32, #tpu.memory_space<vmem>>, %arg9: memref<2x64xf32, #tpu.memory_space<vmem>>, %arg10: memref<2x64x32xf32, #tpu.memory_space<vmem>>, %arg11: memref<14x32xf32, #tpu.memory_space<vmem>>, %arg12: memref<2x2xf32, #tpu.memory_space<vmem>>) attributes {dimension_semantics = [#tpu.dimension_semantics<arbitrary>], iteration_bounds = array<i64: 1>, scalar_prefetch = 0 : i64, scratch_operands = 0 : i64, tpu.core_type = #tpu.core_type<tc>, window_params = [{pipeline_mode = #tpu.pipeline_mode<synchronous>, transform_indices = @transform_0, window_bounds = array<i64: 32, 1>}, {pipeline_mode = #tpu.pipeline_mode<synchronous>, transform_indices = @transform_1, window_bounds = array<i64: 64, 64>}, {pipeline_mode = #tpu.pipeline_mode<synchronous>, transform_indices = @transform_2, window_bounds = array<i64: 100, 32>}, {pipeline_mode = #tpu.pipeline_mode<synchronous>, transform_indices = @transform_3, window_bounds = array<i64: 16, 32>}, {pipeline_mode = #tpu.pipeline_mode<synchronous>, transform_indices = @transform_4, window_bounds = array<i64: 2, 32, 96>}, {pipeline_mode = #tpu.pipeline_mode<synchronous>, transform_indices = @transform_5, window_bounds = array<i64: 2, 96>}, {pipeline_mode = #tpu.pipeline_mode<synchronous>, transform_indices = @transform_6, window_bounds = array<i64: 2, 2, 16, 32>}, {pipeline_mode = #tpu.pipeline_mode<synchronous>, transform_indices = @transform_7, window_bounds = array<i64: 2, 32, 64>}, {pipeline_mode = #tpu.pipeline_mode<synchronous>, transform_indices = @transform_8, window_bounds = array<i64: 2, 64>}, {pipeline_mode = #tpu.pipeline_mode<synchronous>, transform_indices = @transform_9, window_bounds = array<i64: 2, 64, 32>}, {pipeline_mode = #tpu.pipeline_mode<synchronous>, transform_indices = @transform_10, window_bounds = array<i64: 14, 32>}, {pipeline_mode = #tpu.pipeline_mode<synchronous>, transform_indices = @transform_11, window_bounds = array<i64: 2, 2>}]} {
    %c0 = arith.constant 0 : index
    %c0_0 = arith.constant 0 : index
    %0 = vector.load %arg1[%c0, %c0_0] : memref<32x1xi32, #tpu.memory_space<vmem>>, vector<32x1xi32>
    %1 = tpu.iota {dimensions = array<i32: 1>} : vector<32x100xi32>
    %2 = vector.broadcast %0 : vector<32x1xi32> to vector<32x100xi32>
    %3 = arith.cmpi eq, %2, %1 : vector<32x100xi32>
    %4 = arith.extui %3 : vector<32x100xi1> to vector<32x100xi32>
    %5 = arith.sitofp %4 : vector<32x100xi32> to vector<32x100xf32>
    %c0_1 = arith.constant 0 : index
    %c0_2 = arith.constant 0 : index
    %6 = vector.load %arg3[%c0_1, %c0_2] : memref<100x32xf32, #tpu.memory_space<vmem>>, vector<100x32xf32>
    %cst = arith.constant dense<0.000000e+00> : vector<32x32xf32>
    %7 = tpu.matmul %5, %6, %cst {dimension_numbers = #tpu.dot_dimension_numbers<[1], [0], [0], [1], [0, 0, 1, 1], [], []>} : vector<32x100xf32>, vector<100x32xf32>, vector<32x32xf32> -> vector<32x32xf32>
    %8 = tpu.iota {dimensions = array<i32: 0>} : vector<32x1xi32>
    %c8_i32 = arith.constant 8 : i32
    %c0_i32 = arith.constant 0 : i32
    %9 = arith.cmpi eq, %c8_i32, %c0_i32 : i32
    %c1_i32 = arith.constant 1 : i32
    %10 = arith.select %9, %c1_i32, %c8_i32 : i32
    %11 = vector.broadcast %10 : i32 to vector<32x1xi32>
    %12 = arith.remsi %8, %11 : vector<32x1xi32>
    %c0_i32_3 = arith.constant 0 : i32
    %13 = vector.broadcast %c0_i32_3 : i32 to vector<32x1xi32>
    %14 = arith.cmpi ne, %12, %13 : vector<32x1xi32>
    %c0_i32_4 = arith.constant 0 : i32
    %15 = vector.broadcast %c0_i32_4 : i32 to vector<32x1xi32>
    %16 = arith.cmpi slt, %12, %15 : vector<32x1xi32>
    %c0_i32_5 = arith.constant 0 : i32
    %17 = arith.cmpi slt, %10, %c0_i32_5 : i32
    %18 = vector.broadcast %17 : i1 to vector<32x1xi1>
    %19 = vector.broadcast %18 : vector<32x1xi1> to vector<32x1xi1>
    %20 = arith.xori %16, %19 : vector<32x1xi1>
    %21 = arith.andi %20, %14 : vector<32x1xi1>
    %22 = vector.broadcast %10 : i32 to vector<32x1xi32>
    %23 = arith.addi %12, %22 : vector<32x1xi32>
    %24 = arith.select %21, %23, %12 : vector<32x1xi1>, vector<32x1xi32>
    %25 = tpu.iota {dimensions = array<i32: 1>} : vector<32x16xi32>
    %26 = vector.broadcast %24 : vector<32x1xi32> to vector<32x16xi32>
    %27 = arith.cmpi eq, %26, %25 : vector<32x16xi32>
    %28 = arith.extui %27 : vector<32x16xi1> to vector<32x16xi32>
    %29 = arith.sitofp %28 : vector<32x16xi32> to vector<32x16xf32>
    %c0_6 = arith.constant 0 : index
    %c0_7 = arith.constant 0 : index
    %30 = vector.load %arg4[%c0_6, %c0_7] : memref<16x32xf32, #tpu.memory_space<vmem>>, vector<16x32xf32>
    %cst_8 = arith.constant dense<0.000000e+00> : vector<32x32xf32>
    %31 = tpu.matmul %29, %30, %cst_8 {dimension_numbers = #tpu.dot_dimension_numbers<[1], [0], [0], [1], [0, 0, 1, 1], [], []>} : vector<32x16xf32>, vector<16x32xf32>, vector<32x32xf32> -> vector<32x32xf32>
    %32 = arith.addf %7, %31 : vector<32x32xf32>
    %c0_9 = arith.constant 0 : index
    %c0_10 = arith.constant 0 : index
    %33 = vector.load %arg11[%c0_9, %c0_10] : memref<14x32xf32, #tpu.memory_space<vmem>>, vector<1x32xf32>
    %34 = vector.shape_cast %33 : vector<1x32xf32> to vector<32xf32>
    %c1 = arith.constant 1 : index
    %c0_11 = arith.constant 0 : index
    %35 = vector.load %arg11[%c1, %c0_11] : memref<14x32xf32, #tpu.memory_space<vmem>>, vector<1x32xf32>
    %36 = vector.shape_cast %35 : vector<1x32xf32> to vector<32xf32>
    %cst_12 = arith.constant dense<0.000000e+00> : vector<32xf32>
    %37 = vector.multi_reduction <add>, %32, %cst_12 [1] : vector<32x32xf32> to vector<32xf32>
    %38 = vector.shape_cast %37 : vector<32xf32> to vector<32x1xf32>
    %cst_13 = arith.constant 3.200000e+01 : f32
    %39 = vector.broadcast %cst_13 : f32 to vector<32x1xf32>
    %40 = arith.divf %38, %39 : vector<32x1xf32>
    %41 = vector.broadcast %40 : vector<32x1xf32> to vector<32x32xf32>
    %42 = arith.subf %32, %41 : vector<32x32xf32>
    %43 = arith.mulf %42, %42 : vector<32x32xf32>
    %cst_14 = arith.constant dense<0.000000e+00> : vector<32xf32>
    %44 = vector.multi_reduction <add>, %43, %cst_14 [1] : vector<32x32xf32> to vector<32xf32>
    %45 = vector.shape_cast %44 : vector<32xf32> to vector<32x1xf32>
    %cst_15 = arith.constant 3.200000e+01 : f32
    %46 = vector.broadcast %cst_15 : f32 to vector<32x1xf32>
    %47 = arith.divf %45, %46 : vector<32x1xf32>
    %48 = vector.broadcast %40 : vector<32x1xf32> to vector<32x32xf32>
    %49 = arith.subf %32, %48 : vector<32x32xf32>
    %cst_16 = arith.constant 9.99999996E-13 : f32
    %50 = vector.broadcast %cst_16 : f32 to vector<32x1xf32>
    %51 = arith.addf %47, %50 : vector<32x1xf32>
    %52 = math.rsqrt %51 : vector<32x1xf32>
    %53 = vector.broadcast %52 : vector<32x1xf32> to vector<32x32xf32>
    %54 = arith.mulf %49, %53 : vector<32x32xf32>
    %55 = vector.shape_cast %34 : vector<32xf32> to vector<1x32xf32>
    %56 = vector.broadcast %55 : vector<1x32xf32> to vector<32x32xf32>
    %57 = arith.mulf %54, %56 : vector<32x32xf32>
    %58 = vector.shape_cast %36 : vector<32xf32> to vector<1x32xf32>
    %59 = vector.broadcast %58 : vector<1x32xf32> to vector<32x32xf32>
    %60 = arith.addf %57, %59 : vector<32x32xf32>
    %c0_17 = arith.constant 0 : index
    %c0_18 = arith.constant 0 : index
    %61 = vector.load %arg2[%c0_17, %c0_18] : memref<64x64xf32, #tpu.memory_space<vmem>>, vector<64x64xf32>
    %c2 = arith.constant 2 : index
    %c0_19 = arith.constant 0 : index
    %62 = vector.load %arg11[%c2, %c0_19] : memref<14x32xf32, #tpu.memory_space<vmem>>, vector<1x32xf32>
    %63 = vector.shape_cast %62 : vector<1x32xf32> to vector<32xf32>
    %c3 = arith.constant 3 : index
    %c0_20 = arith.constant 0 : index
    %64 = vector.load %arg11[%c3, %c0_20] : memref<14x32xf32, #tpu.memory_space<vmem>>, vector<1x32xf32>
    %65 = vector.shape_cast %64 : vector<1x32xf32> to vector<32xf32>
    %c4 = arith.constant 4 : index
    %c0_21 = arith.constant 0 : index
    %66 = vector.load %arg11[%c4, %c0_21] : memref<14x32xf32, #tpu.memory_space<vmem>>, vector<1x32xf32>
    %67 = vector.shape_cast %66 : vector<1x32xf32> to vector<32xf32>
    %c5 = arith.constant 5 : index
    %c0_22 = arith.constant 0 : index
    %68 = vector.load %arg11[%c5, %c0_22] : memref<14x32xf32, #tpu.memory_space<vmem>>, vector<1x32xf32>
    %69 = vector.shape_cast %68 : vector<1x32xf32> to vector<32xf32>
    %c6 = arith.constant 6 : index
    %c0_23 = arith.constant 0 : index
    %70 = vector.load %arg11[%c6, %c0_23] : memref<14x32xf32, #tpu.memory_space<vmem>>, vector<1x32xf32>
    %71 = vector.shape_cast %70 : vector<1x32xf32> to vector<32xf32>
    %c7 = arith.constant 7 : index
    %c0_24 = arith.constant 0 : index
    %72 = vector.load %arg11[%c7, %c0_24] : memref<14x32xf32, #tpu.memory_space<vmem>>, vector<1x32xf32>
    %73 = vector.shape_cast %72 : vector<1x32xf32> to vector<32xf32>
    %c0_25 = arith.constant 0 : index
    %c0_26 = arith.constant 0 : index
    %c0_27 = arith.constant 0 : index
    %74 = vector.load %arg5[%c0_25, %c0_26, %c0_27] : memref<2x32x96xf32, #tpu.memory_space<vmem>>, vector<1x32x96xf32>
    %75 = vector.shape_cast %74 : vector<1x32x96xf32> to vector<32x96xf32>
    %cst_28 = arith.constant dense<0.000000e+00> : vector<32x96xf32>
    %76 = tpu.matmul %60, %75, %cst_28 {dimension_numbers = #tpu.dot_dimension_numbers<[1], [0], [0], [1], [0, 0, 1, 1], [], []>} : vector<32x32xf32>, vector<32x96xf32>, vector<32x96xf32> -> vector<32x96xf32>
    %c0_29 = arith.constant 0 : index
    %c0_30 = arith.constant 0 : index
    %77 = vector.load %arg6[%c0_29, %c0_30] : memref<2x96xf32, #tpu.memory_space<vmem>>, vector<1x96xf32>
    %78 = vector.shape_cast %77 : vector<1x96xf32> to vector<96xf32>
    %79 = vector.shape_cast %78 : vector<96xf32> to vector<1x96xf32>
    %80 = vector.broadcast %79 : vector<1x96xf32> to vector<32x96xf32>
    %81 = arith.addf %76, %80 : vector<32x96xf32>
    %82 = vector.extract_strided_slice %81 {offsets = [0, 0], sizes = [32, 16], strides = [1, 1]} : vector<32x96xf32> to vector<32x16xf32>
    %83 = vector.extract_strided_slice %81 {offsets = [0, 16], sizes = [32, 16], strides = [1, 1]} : vector<32x96xf32> to vector<32x16xf32>
    %84 = tpu.concatenate %82, %83 in 0 : vector<32x16xf32>, vector<32x16xf32> -> vector<64x16xf32>
    %85 = vector.extract_strided_slice %81 {offsets = [0, 32], sizes = [32, 16], strides = [1, 1]} : vector<32x96xf32> to vector<32x16xf32>
    %86 = vector.extract_strided_slice %81 {offsets = [0, 48], sizes = [32, 16], strides = [1, 1]} : vector<32x96xf32> to vector<32x16xf32>
    %87 = tpu.concatenate %85, %86 in 0 : vector<32x16xf32>, vector<32x16xf32> -> vector<64x16xf32>
    %88 = vector.extract_strided_slice %81 {offsets = [0, 64], sizes = [32, 16], strides = [1, 1]} : vector<32x96xf32> to vector<32x16xf32>
    %89 = vector.extract_strided_slice %81 {offsets = [0, 80], sizes = [32, 16], strides = [1, 1]} : vector<32x96xf32> to vector<32x16xf32>
    %90 = tpu.concatenate %88, %89 in 0 : vector<32x16xf32>, vector<32x16xf32> -> vector<64x16xf32>
    %cst_31 = arith.constant dense<0.000000e+00> : vector<64x64xf32>
    %91 = tpu.matmul %84, %87, %cst_31 {dimension_numbers = #tpu.dot_dimension_numbers<[1], [1], [0], [0], [0, 0, 1, 0], [], []>} : vector<64x16xf32>, vector<64x16xf32>, vector<64x64xf32> -> vector<64x64xf32>
    %cst_32 = arith.constant 2.500000e-01 : f32
    %92 = vector.broadcast %cst_32 : f32 to vector<64x64xf32>
    %93 = arith.mulf %91, %92 : vector<64x64xf32>
    %94 = arith.addf %93, %61 : vector<64x64xf32>
    %cst_33 = arith.constant dense<0xFF800000> : vector<64xf32>
    %95 = vector.multi_reduction <maximumf>, %94, %cst_33 [1] : vector<64x64xf32> to vector<64xf32>
    %96 = vector.shape_cast %95 : vector<64xf32> to vector<64x1xf32>
    %97 = vector.broadcast %96 : vector<64x1xf32> to vector<64x64xf32>
    %98 = arith.subf %94, %97 : vector<64x64xf32>
    %99 = math.exp %98 : vector<64x64xf32>
    %cst_34 = arith.constant dense<0.000000e+00> : vector<64xf32>
    %100 = vector.multi_reduction <add>, %99, %cst_34 [1] : vector<64x64xf32> to vector<64xf32>
    %101 = vector.shape_cast %100 : vector<64xf32> to vector<64x1xf32>
    %102 = tpu.reciprocal %101 {approx = true} : vector<64x1xf32> -> vector<64x1xf32>
    %103 = vector.broadcast %102 : vector<64x1xf32> to vector<64x64xf32>
    %104 = arith.mulf %99, %103 : vector<64x64xf32>
    %cst_35 = arith.constant dense<0.000000e+00> : vector<64x16xf32>
    %105 = tpu.matmul %104, %90, %cst_35 {dimension_numbers = #tpu.dot_dimension_numbers<[1], [0], [0], [1], [0, 0, 1, 1], [], []>} : vector<64x64xf32>, vector<64x16xf32>, vector<64x16xf32> -> vector<64x16xf32>
    %106 = vector.extract_strided_slice %105 {offsets = [0, 0], sizes = [32, 16], strides = [1, 1]} : vector<64x16xf32> to vector<32x16xf32>
    %c0_36 = arith.constant 0 : index
    %c0_37 = arith.constant 0 : index
    %c0_38 = arith.constant 0 : index
    %c0_39 = arith.constant 0 : index
    %107 = vector.load %arg7[%c0_36, %c0_37, %c0_38, %c0_39] : memref<2x2x16x32xf32, #tpu.memory_space<vmem>>, vector<1x1x16x32xf32>
    %108 = vector.shape_cast %107 : vector<1x1x16x32xf32> to vector<16x32xf32>
    %cst_40 = arith.constant dense<0.000000e+00> : vector<32x32xf32>
    %109 = tpu.matmul %106, %108, %cst_40 {dimension_numbers = #tpu.dot_dimension_numbers<[1], [0], [0], [1], [0, 0, 1, 1], [], []>} : vector<32x16xf32>, vector<16x32xf32>, vector<32x32xf32> -> vector<32x32xf32>
    %110 = vector.shape_cast %63 : vector<32xf32> to vector<1x32xf32>
    %111 = vector.broadcast %110 : vector<1x32xf32> to vector<32x32xf32>
    %112 = arith.addf %111, %109 : vector<32x32xf32>
    %113 = vector.extract_strided_slice %105 {offsets = [32, 0], sizes = [32, 16], strides = [1, 1]} : vector<64x16xf32> to vector<32x16xf32>
    %c0_41 = arith.constant 0 : index
    %c1_42 = arith.constant 1 : index
    %c0_43 = arith.constant 0 : index
    %c0_44 = arith.constant 0 : index
    %114 = vector.load %arg7[%c0_41, %c1_42, %c0_43, %c0_44] : memref<2x2x16x32xf32, #tpu.memory_space<vmem>>, vector<1x1x16x32xf32>
    %115 = vector.shape_cast %114 : vector<1x1x16x32xf32> to vector<16x32xf32>
    %cst_45 = arith.constant dense<0.000000e+00> : vector<32x32xf32>
    %116 = tpu.matmul %113, %115, %cst_45 {dimension_numbers = #tpu.dot_dimension_numbers<[1], [0], [0], [1], [0, 0, 1, 1], [], []>} : vector<32x16xf32>, vector<16x32xf32>, vector<32x32xf32> -> vector<32x32xf32>
    %117 = arith.addf %112, %116 : vector<32x32xf32>
    %118 = arith.addf %117, %60 : vector<32x32xf32>
    %cst_46 = arith.constant dense<0.000000e+00> : vector<32xf32>
    %119 = vector.multi_reduction <add>, %118, %cst_46 [1] : vector<32x32xf32> to vector<32xf32>
    %120 = vector.shape_cast %119 : vector<32xf32> to vector<32x1xf32>
    %cst_47 = arith.constant 3.200000e+01 : f32
    %121 = vector.broadcast %cst_47 : f32 to vector<32x1xf32>
    %122 = arith.divf %120, %121 : vector<32x1xf32>
    %123 = vector.broadcast %122 : vector<32x1xf32> to vector<32x32xf32>
    %124 = arith.subf %118, %123 : vector<32x32xf32>
    %125 = arith.mulf %124, %124 : vector<32x32xf32>
    %cst_48 = arith.constant dense<0.000000e+00> : vector<32xf32>
    %126 = vector.multi_reduction <add>, %125, %cst_48 [1] : vector<32x32xf32> to vector<32xf32>
    %127 = vector.shape_cast %126 : vector<32xf32> to vector<32x1xf32>
    %cst_49 = arith.constant 3.200000e+01 : f32
    %128 = vector.broadcast %cst_49 : f32 to vector<32x1xf32>
    %129 = arith.divf %127, %128 : vector<32x1xf32>
    %130 = vector.broadcast %122 : vector<32x1xf32> to vector<32x32xf32>
    %131 = arith.subf %118, %130 : vector<32x32xf32>
    %cst_50 = arith.constant 9.99999996E-13 : f32
    %132 = vector.broadcast %cst_50 : f32 to vector<32x1xf32>
    %133 = arith.addf %129, %132 : vector<32x1xf32>
    %134 = math.rsqrt %133 : vector<32x1xf32>
    %135 = vector.broadcast %134 : vector<32x1xf32> to vector<32x32xf32>
    %136 = arith.mulf %131, %135 : vector<32x32xf32>
    %137 = vector.shape_cast %65 : vector<32xf32> to vector<1x32xf32>
    %138 = vector.broadcast %137 : vector<1x32xf32> to vector<32x32xf32>
    %139 = arith.mulf %136, %138 : vector<32x32xf32>
    %140 = vector.shape_cast %67 : vector<32xf32> to vector<1x32xf32>
    %141 = vector.broadcast %140 : vector<1x32xf32> to vector<32x32xf32>
    %142 = arith.addf %139, %141 : vector<32x32xf32>
    %c0_51 = arith.constant 0 : index
    %c0_52 = arith.constant 0 : index
    %c0_53 = arith.constant 0 : index
    %143 = vector.load %arg8[%c0_51, %c0_52, %c0_53] : memref<2x32x64xf32, #tpu.memory_space<vmem>>, vector<1x32x64xf32>
    %144 = vector.shape_cast %143 : vector<1x32x64xf32> to vector<32x64xf32>
    %cst_54 = arith.constant dense<0.000000e+00> : vector<32x64xf32>
    %145 = tpu.matmul %142, %144, %cst_54 {dimension_numbers = #tpu.dot_dimension_numbers<[1], [0], [0], [1], [0, 0, 1, 1], [], []>} : vector<32x32xf32>, vector<32x64xf32>, vector<32x64xf32> -> vector<32x64xf32>
    %c0_55 = arith.constant 0 : index
    %c0_56 = arith.constant 0 : index
    %146 = vector.load %arg9[%c0_55, %c0_56] : memref<2x64xf32, #tpu.memory_space<vmem>>, vector<1x64xf32>
    %147 = vector.shape_cast %146 : vector<1x64xf32> to vector<64xf32>
    %148 = vector.shape_cast %147 : vector<64xf32> to vector<1x64xf32>
    %149 = vector.broadcast %148 : vector<1x64xf32> to vector<32x64xf32>
    %150 = arith.addf %145, %149 : vector<32x64xf32>
    %cst_57 = arith.constant 5.000000e-01 : f32
    %151 = vector.broadcast %cst_57 : f32 to vector<32x64xf32>
    %152 = arith.mulf %151, %150 : vector<32x64xf32>
    %cst_58 = arith.constant 4.471500e-02 : f32
    %153 = vector.broadcast %cst_58 : f32 to vector<32x64xf32>
    %154 = arith.mulf %153, %150 : vector<32x64xf32>
    %155 = arith.mulf %154, %150 : vector<32x64xf32>
    %156 = arith.mulf %155, %150 : vector<32x64xf32>
    %157 = arith.addf %150, %156 : vector<32x64xf32>
    %cst_59 = arith.constant 0.797884583 : f32
    %158 = vector.broadcast %cst_59 : f32 to vector<32x64xf32>
    %159 = arith.mulf %158, %157 : vector<32x64xf32>
    %160 = math.tanh %159 : vector<32x64xf32>
    %cst_60 = arith.constant 1.000000e+00 : f32
    %161 = vector.broadcast %cst_60 : f32 to vector<32x64xf32>
    %162 = arith.addf %161, %160 : vector<32x64xf32>
    %163 = arith.mulf %152, %162 : vector<32x64xf32>
    %c0_61 = arith.constant 0 : index
    %c0_62 = arith.constant 0 : index
    %c0_63 = arith.constant 0 : index
    %164 = vector.load %arg10[%c0_61, %c0_62, %c0_63] : memref<2x64x32xf32, #tpu.memory_space<vmem>>, vector<1x64x32xf32>
    %165 = vector.shape_cast %164 : vector<1x64x32xf32> to vector<64x32xf32>
    %cst_64 = arith.constant dense<0.000000e+00> : vector<32x32xf32>
    %166 = tpu.matmul %163, %165, %cst_64 {dimension_numbers = #tpu.dot_dimension_numbers<[1], [0], [0], [1], [0, 0, 1, 1], [], []>} : vector<32x64xf32>, vector<64x32xf32>, vector<32x32xf32> -> vector<32x32xf32>
    %167 = vector.shape_cast %69 : vector<32xf32> to vector<1x32xf32>
    %168 = vector.broadcast %167 : vector<1x32xf32> to vector<32x32xf32>
    %169 = arith.addf %166, %168 : vector<32x32xf32>
    %170 = arith.addf %169, %142 : vector<32x32xf32>
    %cst_65 = arith.constant dense<0.000000e+00> : vector<32xf32>
    %171 = vector.multi_reduction <add>, %170, %cst_65 [1] : vector<32x32xf32> to vector<32xf32>
    %172 = vector.shape_cast %171 : vector<32xf32> to vector<32x1xf32>
    %cst_66 = arith.constant 3.200000e+01 : f32
    %173 = vector.broadcast %cst_66 : f32 to vector<32x1xf32>
    %174 = arith.divf %172, %173 : vector<32x1xf32>
    %175 = vector.broadcast %174 : vector<32x1xf32> to vector<32x32xf32>
    %176 = arith.subf %170, %175 : vector<32x32xf32>
    %177 = arith.mulf %176, %176 : vector<32x32xf32>
    %cst_67 = arith.constant dense<0.000000e+00> : vector<32xf32>
    %178 = vector.multi_reduction <add>, %177, %cst_67 [1] : vector<32x32xf32> to vector<32xf32>
    %179 = vector.shape_cast %178 : vector<32xf32> to vector<32x1xf32>
    %cst_68 = arith.constant 3.200000e+01 : f32
    %180 = vector.broadcast %cst_68 : f32 to vector<32x1xf32>
    %181 = arith.divf %179, %180 : vector<32x1xf32>
    %182 = vector.broadcast %174 : vector<32x1xf32> to vector<32x32xf32>
    %183 = arith.subf %170, %182 : vector<32x32xf32>
    %cst_69 = arith.constant 9.99999996E-13 : f32
    %184 = vector.broadcast %cst_69 : f32 to vector<32x1xf32>
    %185 = arith.addf %181, %184 : vector<32x1xf32>
    %186 = math.rsqrt %185 : vector<32x1xf32>
    %187 = vector.broadcast %186 : vector<32x1xf32> to vector<32x32xf32>
    %188 = arith.mulf %183, %187 : vector<32x32xf32>
    %189 = vector.shape_cast %71 : vector<32xf32> to vector<1x32xf32>
    %190 = vector.broadcast %189 : vector<1x32xf32> to vector<32x32xf32>
    %191 = arith.mulf %188, %190 : vector<32x32xf32>
    %192 = vector.shape_cast %73 : vector<32xf32> to vector<1x32xf32>
    %193 = vector.broadcast %192 : vector<1x32xf32> to vector<32x32xf32>
    %194 = arith.addf %191, %193 : vector<32x32xf32>
    %c8 = arith.constant 8 : index
    %c0_70 = arith.constant 0 : index
    %195 = vector.load %arg11[%c8, %c0_70] : memref<14x32xf32, #tpu.memory_space<vmem>>, vector<1x32xf32>
    %196 = vector.shape_cast %195 : vector<1x32xf32> to vector<32xf32>
    %c9 = arith.constant 9 : index
    %c0_71 = arith.constant 0 : index
    %197 = vector.load %arg11[%c9, %c0_71] : memref<14x32xf32, #tpu.memory_space<vmem>>, vector<1x32xf32>
    %198 = vector.shape_cast %197 : vector<1x32xf32> to vector<32xf32>
    %c10 = arith.constant 10 : index
    %c0_72 = arith.constant 0 : index
    %199 = vector.load %arg11[%c10, %c0_72] : memref<14x32xf32, #tpu.memory_space<vmem>>, vector<1x32xf32>
    %200 = vector.shape_cast %199 : vector<1x32xf32> to vector<32xf32>
    %c11 = arith.constant 11 : index
    %c0_73 = arith.constant 0 : index
    %201 = vector.load %arg11[%c11, %c0_73] : memref<14x32xf32, #tpu.memory_space<vmem>>, vector<1x32xf32>
    %202 = vector.shape_cast %201 : vector<1x32xf32> to vector<32xf32>
    %c12 = arith.constant 12 : index
    %c0_74 = arith.constant 0 : index
    %203 = vector.load %arg11[%c12, %c0_74] : memref<14x32xf32, #tpu.memory_space<vmem>>, vector<1x32xf32>
    %204 = vector.shape_cast %203 : vector<1x32xf32> to vector<32xf32>
    %c13 = arith.constant 13 : index
    %c0_75 = arith.constant 0 : index
    %205 = vector.load %arg11[%c13, %c0_75] : memref<14x32xf32, #tpu.memory_space<vmem>>, vector<1x32xf32>
    %206 = vector.shape_cast %205 : vector<1x32xf32> to vector<32xf32>
    %c1_76 = arith.constant 1 : index
    %c0_77 = arith.constant 0 : index
    %c0_78 = arith.constant 0 : index
    %207 = vector.load %arg5[%c1_76, %c0_77, %c0_78] : memref<2x32x96xf32, #tpu.memory_space<vmem>>, vector<1x32x96xf32>
    %208 = vector.shape_cast %207 : vector<1x32x96xf32> to vector<32x96xf32>
    %cst_79 = arith.constant dense<0.000000e+00> : vector<32x96xf32>
    %209 = tpu.matmul %194, %208, %cst_79 {dimension_numbers = #tpu.dot_dimension_numbers<[1], [0], [0], [1], [0, 0, 1, 1], [], []>} : vector<32x32xf32>, vector<32x96xf32>, vector<32x96xf32> -> vector<32x96xf32>
    %c1_80 = arith.constant 1 : index
    %c0_81 = arith.constant 0 : index
    %210 = vector.load %arg6[%c1_80, %c0_81] : memref<2x96xf32, #tpu.memory_space<vmem>>, vector<1x96xf32>
    %211 = vector.shape_cast %210 : vector<1x96xf32> to vector<96xf32>
    %212 = vector.shape_cast %211 : vector<96xf32> to vector<1x96xf32>
    %213 = vector.broadcast %212 : vector<1x96xf32> to vector<32x96xf32>
    %214 = arith.addf %209, %213 : vector<32x96xf32>
    %215 = vector.extract_strided_slice %214 {offsets = [0, 0], sizes = [32, 16], strides = [1, 1]} : vector<32x96xf32> to vector<32x16xf32>
    %216 = vector.extract_strided_slice %214 {offsets = [0, 16], sizes = [32, 16], strides = [1, 1]} : vector<32x96xf32> to vector<32x16xf32>
    %217 = tpu.concatenate %215, %216 in 0 : vector<32x16xf32>, vector<32x16xf32> -> vector<64x16xf32>
    %218 = vector.extract_strided_slice %214 {offsets = [0, 32], sizes = [32, 16], strides = [1, 1]} : vector<32x96xf32> to vector<32x16xf32>
    %219 = vector.extract_strided_slice %214 {offsets = [0, 48], sizes = [32, 16], strides = [1, 1]} : vector<32x96xf32> to vector<32x16xf32>
    %220 = tpu.concatenate %218, %219 in 0 : vector<32x16xf32>, vector<32x16xf32> -> vector<64x16xf32>
    %221 = vector.extract_strided_slice %214 {offsets = [0, 64], sizes = [32, 16], strides = [1, 1]} : vector<32x96xf32> to vector<32x16xf32>
    %222 = vector.extract_strided_slice %214 {offsets = [0, 80], sizes = [32, 16], strides = [1, 1]} : vector<32x96xf32> to vector<32x16xf32>
    %223 = tpu.concatenate %221, %222 in 0 : vector<32x16xf32>, vector<32x16xf32> -> vector<64x16xf32>
    %cst_82 = arith.constant dense<0.000000e+00> : vector<64x64xf32>
    %224 = tpu.matmul %217, %220, %cst_82 {dimension_numbers = #tpu.dot_dimension_numbers<[1], [1], [0], [0], [0, 0, 1, 0], [], []>} : vector<64x16xf32>, vector<64x16xf32>, vector<64x64xf32> -> vector<64x64xf32>
    %cst_83 = arith.constant 2.500000e-01 : f32
    %225 = vector.broadcast %cst_83 : f32 to vector<64x64xf32>
    %226 = arith.mulf %224, %225 : vector<64x64xf32>
    %227 = arith.addf %226, %61 : vector<64x64xf32>
    %cst_84 = arith.constant dense<0xFF800000> : vector<64xf32>
    %228 = vector.multi_reduction <maximumf>, %227, %cst_84 [1] : vector<64x64xf32> to vector<64xf32>
    %229 = vector.shape_cast %228 : vector<64xf32> to vector<64x1xf32>
    %230 = vector.broadcast %229 : vector<64x1xf32> to vector<64x64xf32>
    %231 = arith.subf %227, %230 : vector<64x64xf32>
    %232 = math.exp %231 : vector<64x64xf32>
    %cst_85 = arith.constant dense<0.000000e+00> : vector<64xf32>
    %233 = vector.multi_reduction <add>, %232, %cst_85 [1] : vector<64x64xf32> to vector<64xf32>
    %234 = vector.shape_cast %233 : vector<64xf32> to vector<64x1xf32>
    %235 = tpu.reciprocal %234 {approx = true} : vector<64x1xf32> -> vector<64x1xf32>
    %236 = vector.broadcast %235 : vector<64x1xf32> to vector<64x64xf32>
    %237 = arith.mulf %232, %236 : vector<64x64xf32>
    %cst_86 = arith.constant dense<0.000000e+00> : vector<64x16xf32>
    %238 = tpu.matmul %237, %223, %cst_86 {dimension_numbers = #tpu.dot_dimension_numbers<[1], [0], [0], [1], [0, 0, 1, 1], [], []>} : vector<64x64xf32>, vector<64x16xf32>, vector<64x16xf32> -> vector<64x16xf32>
    %239 = vector.extract_strided_slice %238 {offsets = [0, 0], sizes = [32, 16], strides = [1, 1]} : vector<64x16xf32> to vector<32x16xf32>
    %c1_87 = arith.constant 1 : index
    %c0_88 = arith.constant 0 : index
    %c0_89 = arith.constant 0 : index
    %c0_90 = arith.constant 0 : index
    %240 = vector.load %arg7[%c1_87, %c0_88, %c0_89, %c0_90] : memref<2x2x16x32xf32, #tpu.memory_space<vmem>>, vector<1x1x16x32xf32>
    %241 = vector.shape_cast %240 : vector<1x1x16x32xf32> to vector<16x32xf32>
    %cst_91 = arith.constant dense<0.000000e+00> : vector<32x32xf32>
    %242 = tpu.matmul %239, %241, %cst_91 {dimension_numbers = #tpu.dot_dimension_numbers<[1], [0], [0], [1], [0, 0, 1, 1], [], []>} : vector<32x16xf32>, vector<16x32xf32>, vector<32x32xf32> -> vector<32x32xf32>
    %243 = vector.shape_cast %196 : vector<32xf32> to vector<1x32xf32>
    %244 = vector.broadcast %243 : vector<1x32xf32> to vector<32x32xf32>
    %245 = arith.addf %244, %242 : vector<32x32xf32>
    %246 = vector.extract_strided_slice %238 {offsets = [32, 0], sizes = [32, 16], strides = [1, 1]} : vector<64x16xf32> to vector<32x16xf32>
    %c1_92 = arith.constant 1 : index
    %c1_93 = arith.constant 1 : index
    %c0_94 = arith.constant 0 : index
    %c0_95 = arith.constant 0 : index
    %247 = vector.load %arg7[%c1_92, %c1_93, %c0_94, %c0_95] : memref<2x2x16x32xf32, #tpu.memory_space<vmem>>, vector<1x1x16x32xf32>
    %248 = vector.shape_cast %247 : vector<1x1x16x32xf32> to vector<16x32xf32>
    %cst_96 = arith.constant dense<0.000000e+00> : vector<32x32xf32>
    %249 = tpu.matmul %246, %248, %cst_96 {dimension_numbers = #tpu.dot_dimension_numbers<[1], [0], [0], [1], [0, 0, 1, 1], [], []>} : vector<32x16xf32>, vector<16x32xf32>, vector<32x32xf32> -> vector<32x32xf32>
    %250 = arith.addf %245, %249 : vector<32x32xf32>
    %251 = arith.addf %250, %194 : vector<32x32xf32>
    %cst_97 = arith.constant dense<0.000000e+00> : vector<32xf32>
    %252 = vector.multi_reduction <add>, %251, %cst_97 [1] : vector<32x32xf32> to vector<32xf32>
    %253 = vector.shape_cast %252 : vector<32xf32> to vector<32x1xf32>
    %cst_98 = arith.constant 3.200000e+01 : f32
    %254 = vector.broadcast %cst_98 : f32 to vector<32x1xf32>
    %255 = arith.divf %253, %254 : vector<32x1xf32>
    %256 = vector.broadcast %255 : vector<32x1xf32> to vector<32x32xf32>
    %257 = arith.subf %251, %256 : vector<32x32xf32>
    %258 = arith.mulf %257, %257 : vector<32x32xf32>
    %cst_99 = arith.constant dense<0.000000e+00> : vector<32xf32>
    %259 = vector.multi_reduction <add>, %258, %cst_99 [1] : vector<32x32xf32> to vector<32xf32>
    %260 = vector.shape_cast %259 : vector<32xf32> to vector<32x1xf32>
    %cst_100 = arith.constant 3.200000e+01 : f32
    %261 = vector.broadcast %cst_100 : f32 to vector<32x1xf32>
    %262 = arith.divf %260, %261 : vector<32x1xf32>
    %263 = vector.broadcast %255 : vector<32x1xf32> to vector<32x32xf32>
    %264 = arith.subf %251, %263 : vector<32x32xf32>
    %cst_101 = arith.constant 9.99999996E-13 : f32
    %265 = vector.broadcast %cst_101 : f32 to vector<32x1xf32>
    %266 = arith.addf %262, %265 : vector<32x1xf32>
    %267 = math.rsqrt %266 : vector<32x1xf32>
    %268 = vector.broadcast %267 : vector<32x1xf32> to vector<32x32xf32>
    %269 = arith.mulf %264, %268 : vector<32x32xf32>
    %270 = vector.shape_cast %198 : vector<32xf32> to vector<1x32xf32>
    %271 = vector.broadcast %270 : vector<1x32xf32> to vector<32x32xf32>
    %272 = arith.mulf %269, %271 : vector<32x32xf32>
    %273 = vector.shape_cast %200 : vector<32xf32> to vector<1x32xf32>
    %274 = vector.broadcast %273 : vector<1x32xf32> to vector<32x32xf32>
    %275 = arith.addf %272, %274 : vector<32x32xf32>
    %c1_102 = arith.constant 1 : index
    %c0_103 = arith.constant 0 : index
    %c0_104 = arith.constant 0 : index
    %276 = vector.load %arg8[%c1_102, %c0_103, %c0_104] : memref<2x32x64xf32, #tpu.memory_space<vmem>>, vector<1x32x64xf32>
    %277 = vector.shape_cast %276 : vector<1x32x64xf32> to vector<32x64xf32>
    %cst_105 = arith.constant dense<0.000000e+00> : vector<32x64xf32>
    %278 = tpu.matmul %275, %277, %cst_105 {dimension_numbers = #tpu.dot_dimension_numbers<[1], [0], [0], [1], [0, 0, 1, 1], [], []>} : vector<32x32xf32>, vector<32x64xf32>, vector<32x64xf32> -> vector<32x64xf32>
    %c1_106 = arith.constant 1 : index
    %c0_107 = arith.constant 0 : index
    %279 = vector.load %arg9[%c1_106, %c0_107] : memref<2x64xf32, #tpu.memory_space<vmem>>, vector<1x64xf32>
    %280 = vector.shape_cast %279 : vector<1x64xf32> to vector<64xf32>
    %281 = vector.shape_cast %280 : vector<64xf32> to vector<1x64xf32>
    %282 = vector.broadcast %281 : vector<1x64xf32> to vector<32x64xf32>
    %283 = arith.addf %278, %282 : vector<32x64xf32>
    %cst_108 = arith.constant 5.000000e-01 : f32
    %284 = vector.broadcast %cst_108 : f32 to vector<32x64xf32>
    %285 = arith.mulf %284, %283 : vector<32x64xf32>
    %cst_109 = arith.constant 4.471500e-02 : f32
    %286 = vector.broadcast %cst_109 : f32 to vector<32x64xf32>
    %287 = arith.mulf %286, %283 : vector<32x64xf32>
    %288 = arith.mulf %287, %283 : vector<32x64xf32>
    %289 = arith.mulf %288, %283 : vector<32x64xf32>
    %290 = arith.addf %283, %289 : vector<32x64xf32>
    %cst_110 = arith.constant 0.797884583 : f32
    %291 = vector.broadcast %cst_110 : f32 to vector<32x64xf32>
    %292 = arith.mulf %291, %290 : vector<32x64xf32>
    %293 = math.tanh %292 : vector<32x64xf32>
    %cst_111 = arith.constant 1.000000e+00 : f32
    %294 = vector.broadcast %cst_111 : f32 to vector<32x64xf32>
    %295 = arith.addf %294, %293 : vector<32x64xf32>
    %296 = arith.mulf %285, %295 : vector<32x64xf32>
    %c1_112 = arith.constant 1 : index
    %c0_113 = arith.constant 0 : index
    %c0_114 = arith.constant 0 : index
    %297 = vector.load %arg10[%c1_112, %c0_113, %c0_114] : memref<2x64x32xf32, #tpu.memory_space<vmem>>, vector<1x64x32xf32>
    %298 = vector.shape_cast %297 : vector<1x64x32xf32> to vector<64x32xf32>
    %cst_115 = arith.constant dense<0.000000e+00> : vector<32x32xf32>
    %299 = tpu.matmul %296, %298, %cst_115 {dimension_numbers = #tpu.dot_dimension_numbers<[1], [0], [0], [1], [0, 0, 1, 1], [], []>} : vector<32x64xf32>, vector<64x32xf32>, vector<32x32xf32> -> vector<32x32xf32>
    %300 = vector.shape_cast %202 : vector<32xf32> to vector<1x32xf32>
    %301 = vector.broadcast %300 : vector<1x32xf32> to vector<32x32xf32>
    %302 = arith.addf %299, %301 : vector<32x32xf32>
    %303 = arith.addf %302, %275 : vector<32x32xf32>
    %cst_116 = arith.constant dense<0.000000e+00> : vector<32xf32>
    %304 = vector.multi_reduction <add>, %303, %cst_116 [1] : vector<32x32xf32> to vector<32xf32>
    %305 = vector.shape_cast %304 : vector<32xf32> to vector<32x1xf32>
    %cst_117 = arith.constant 3.200000e+01 : f32
    %306 = vector.broadcast %cst_117 : f32 to vector<32x1xf32>
    %307 = arith.divf %305, %306 : vector<32x1xf32>
    %308 = vector.broadcast %307 : vector<32x1xf32> to vector<32x32xf32>
    %309 = arith.subf %303, %308 : vector<32x32xf32>
    %310 = arith.mulf %309, %309 : vector<32x32xf32>
    %cst_118 = arith.constant dense<0.000000e+00> : vector<32xf32>
    %311 = vector.multi_reduction <add>, %310, %cst_118 [1] : vector<32x32xf32> to vector<32xf32>
    %312 = vector.shape_cast %311 : vector<32xf32> to vector<32x1xf32>
    %cst_119 = arith.constant 3.200000e+01 : f32
    %313 = vector.broadcast %cst_119 : f32 to vector<32x1xf32>
    %314 = arith.divf %312, %313 : vector<32x1xf32>
    %315 = vector.broadcast %307 : vector<32x1xf32> to vector<32x32xf32>
    %316 = arith.subf %303, %315 : vector<32x32xf32>
    %cst_120 = arith.constant 9.99999996E-13 : f32
    %317 = vector.broadcast %cst_120 : f32 to vector<32x1xf32>
    %318 = arith.addf %314, %317 : vector<32x1xf32>
    %319 = math.rsqrt %318 : vector<32x1xf32>
    %320 = vector.broadcast %319 : vector<32x1xf32> to vector<32x32xf32>
    %321 = arith.mulf %316, %320 : vector<32x32xf32>
    %322 = vector.shape_cast %204 : vector<32xf32> to vector<1x32xf32>
    %323 = vector.broadcast %322 : vector<1x32xf32> to vector<32x32xf32>
    %324 = arith.mulf %321, %323 : vector<32x32xf32>
    %325 = vector.shape_cast %206 : vector<32xf32> to vector<1x32xf32>
    %326 = vector.broadcast %325 : vector<1x32xf32> to vector<32x32xf32>
    %327 = arith.addf %324, %326 : vector<32x32xf32>
    %328 = vector.shape_cast %327 : vector<32x32xf32> to vector<4x8x32xf32>
    %329 = vector.extract_strided_slice %328 {offsets = [0, 0, 0], sizes = [4, 1, 32], strides = [1, 1, 1]} : vector<4x8x32xf32> to vector<4x1x32xf32>
    %330 = vector.shape_cast %329 : vector<4x1x32xf32> to vector<4x32xf32>
    %331 = vector.extract_strided_slice %330 {offsets = [0, 0], sizes = [2, 32], strides = [1, 1]} : vector<4x32xf32> to vector<2x32xf32>
    %332 = vector.extract_strided_slice %330 {offsets = [2, 0], sizes = [2, 32], strides = [1, 1]} : vector<4x32xf32> to vector<2x32xf32>
    %cst_121 = arith.constant dense<0.000000e+00> : vector<2x2xf32>
    %333 = tpu.matmul %331, %332, %cst_121 {dimension_numbers = #tpu.dot_dimension_numbers<[1], [1], [0], [0], [0, 0, 1, 0], [], []>} : vector<2x32xf32>, vector<2x32xf32>, vector<2x2xf32> -> vector<2x2xf32>
    %c0_122 = arith.constant 0 : index
    %c0_123 = arith.constant 0 : index
    %334 = vector.load %arg12[%c0_122, %c0_123] : memref<2x2xf32, #tpu.memory_space<vmem>>, vector<2x2xf32>
    tpu.vector_store %arg12[%c0_122, %c0_123], %333 {strides = array<i32>} : memref<2x2xf32, #tpu.memory_space<vmem>>, vector<2x2xf32>,
    return
  }
  func.func @transform_0(%arg0: i32) -> (i32, i32) {
    %c0_i32 = arith.constant 0 : i32
    %c0_i32_0 = arith.constant 0 : i32
    %c0_i32_1 = arith.constant 0 : i32
    return %c0_i32, %c0_i32_0 : i32, i32
  }
  func.func @transform_1(%arg0: i32) -> (i32, i32) {
    %c0_i32 = arith.constant 0 : i32
    %c0_i32_0 = arith.constant 0 : i32
    %c0_i32_1 = arith.constant 0 : i32
    return %c0_i32, %c0_i32_0 : i32, i32
  }
  func.func @transform_2(%arg0: i32) -> (i32, i32) {
    %c0_i32 = arith.constant 0 : i32
    %c0_i32_0 = arith.constant 0 : i32
    %c0_i32_1 = arith.constant 0 : i32
    return %c0_i32, %c0_i32_0 : i32, i32
  }
  func.func @transform_3(%arg0: i32) -> (i32, i32) {
    %c0_i32 = arith.constant 0 : i32
    %c0_i32_0 = arith.constant 0 : i32
    %c0_i32_1 = arith.constant 0 : i32
    return %c0_i32, %c0_i32_0 : i32, i32
  }
  func.func @transform_4(%arg0: i32) -> (i32, i32, i32) {
    %c0_i32 = arith.constant 0 : i32
    %c0_i32_0 = arith.constant 0 : i32
    %c0_i32_1 = arith.constant 0 : i32
    %c0_i32_2 = arith.constant 0 : i32
    return %c0_i32, %c0_i32_0, %c0_i32_1 : i32, i32, i32
  }
  func.func @transform_5(%arg0: i32) -> (i32, i32) {
    %c0_i32 = arith.constant 0 : i32
    %c0_i32_0 = arith.constant 0 : i32
    %c0_i32_1 = arith.constant 0 : i32
    return %c0_i32, %c0_i32_0 : i32, i32
  }
  func.func @transform_6(%arg0: i32) -> (i32, i32, i32, i32) {
    %c0_i32 = arith.constant 0 : i32
    %c0_i32_0 = arith.constant 0 : i32
    %c0_i32_1 = arith.constant 0 : i32
    %c0_i32_2 = arith.constant 0 : i32
    %c0_i32_3 = arith.constant 0 : i32
    return %c0_i32, %c0_i32_0, %c0_i32_1, %c0_i32_2 : i32, i32, i32, i32
  }
  func.func @transform_7(%arg0: i32) -> (i32, i32, i32) {
    %c0_i32 = arith.constant 0 : i32
    %c0_i32_0 = arith.constant 0 : i32
    %c0_i32_1 = arith.constant 0 : i32
    %c0_i32_2 = arith.constant 0 : i32
    return %c0_i32, %c0_i32_0, %c0_i32_1 : i32, i32, i32
  }
  func.func @transform_8(%arg0: i32) -> (i32, i32) {
    %c0_i32 = arith.constant 0 : i32
    %c0_i32_0 = arith.constant 0 : i32
    %c0_i32_1 = arith.constant 0 : i32
    return %c0_i32, %c0_i32_0 : i32, i32
  }
  func.func @transform_9(%arg0: i32) -> (i32, i32, i32) {
    %c0_i32 = arith.constant 0 : i32
    %c0_i32_0 = arith.constant 0 : i32
    %c0_i32_1 = arith.constant 0 : i32
    %c0_i32_2 = arith.constant 0 : i32
    return %c0_i32, %c0_i32_0, %c0_i32_1 : i32, i32, i32
  }
  func.func @transform_10(%arg0: i32) -> (i32, i32) {
    %c0_i32 = arith.constant 0 : i32
    %c0_i32_0 = arith.constant 0 : i32
    %c0_i32_1 = arith.constant 0 : i32
    return %c0_i32, %c0_i32_0 : i32, i32
  }
  func.func @transform_11(%arg0: i32) -> (i32, i32) {
    %c0_i32 = arith.constant 0 : i32
    %c0_i32_0 = arith.constant 0 : i32
    %c0_i32_1 = arith.constant 0 : i32
    return %c0_i32, %c0_i32_0 : i32, i32
  }
}

</mosaic_0001>

<bundles_post_ra>
// kernel: dual_encoder_forward.1
= control target key start
LH: loop header
LB: loop body
LE: loop exit
PB: predicated region body
PF: predicated region fallthrough
CT: control target
= control target key end

     0   :  { %v43_v2 = vlaneseq  ;;  %v3877_v3 = vmov 0   ;;  %vm149_vm0 = vcmask 130048   ;;  %s4607_s0 = inlined_call_operand.vmem [shape: s32[32,1], index: 0, kind: input, shape index: {}]   ;;  %s4608_s1 = inlined_call_operand.vmem [shape: f32[64,64], index: 1, kind: input, shape index: {}]   ;;  %s4609_s2 = inlined_call_operand.vmem [shape: f32[100,32], index: 2, kind: input, shape index: {}]   ;;  %s4610_s3 = inlined_call_operand.vmem [shape: f32[16,32], index: 3, kind: input, shape index: {}]   ;;  %s4611_s4 = inlined_call_operand.vmem [shape: f32[2,32,96], index: 4, kind: input, shape index: {}]   ;;  %s4612_s5 = inlined_call_operand.vmem [shape: f32[2,96], index: 5, kind: input, shape index: {}]   ;;  %s4613_s6 = inlined_call_operand.vmem [shape: f32[2,2,16,32], index: 6, kind: input, shape index: {}]   ;;  %s4614_s7 = inlined_call_operand.vmem [shape: f32[2,32,64], index: 7, kind: input, shape index: {}]   ;;  %s4615_s8 = inlined_call_operand.vmem [shape: f32[2,64], index: 8, kind: input, shape index: {}]   ;;  %s4616_s9 = inlined_call_operand.vmem [shape: f32[2,64,32], index: 9, kind: input, shape index: {}]   ;;  %s4617_s10 = inlined_call_operand.vmem [shape: f32[14,32], index: 10, kind: input, shape index: {}]   ;;  %s4618_s11 = inlined_call_operand.hbm [shape: f32[2,2], index: 11, kind: output, shape index: {}]  }
   0x1   :  { %v41_v0 = vld [vmem:[%s4607_s0 + $0x10] sm:$0xff]  ;;  %v39_v1 = vld [vmem:[%s4607_s0] sm:$0xff]  ;;  %3644 = vset.pattern.permute.xlu1 %v3877_v3  ;;  %3643 = vset.pattern.permute.xlu0 %v3877_v3  ;;  %v70_v5 = vld [vmem:[%s4609_s2 + $0x8] sm:$0xff] }
   0x2   :  { %v69_v4 = vld [vmem:[%s4609_s2] sm:$0xff]  ;;  %52 = vperm.xlu1 %3644, %v41_v0   ;;  %46 = vperm.xlu0 %3643, %v39_v1   ;;  %v42_v6 = vld [vmem:[%s4607_s0 + $0x18] sm:$0xff]  ;;  %v71_v8 = vld [vmem:[%s4609_s2 + $0x10] sm:$0xff]  ;;  %v83_v10 = vshrl.u32 %v43_v2, 7  ;;  %v3974_v15 = vand.u32 127, %v43_v2 }
   0x3   :  { %v3432_v7 = vpack.c.bf16 %v70_v5, %v69_v4  ;;  %v72_v9 = vld [vmem:[%s4609_s2 + $0x18] sm:$0xff]  ;;  %v40_v11 = vld [vmem:[%s4607_s0 + $0x8] sm:$0xff]  ;;  %v73_v13 = vld [vmem:[%s4609_s2 + $0x20] sm:$0xff] }
   0x4   :  { %v3436_v12 = vpack.c.bf16 %v72_v9, %v71_v8  ;;  %v74_v14 = vld [vmem:[%s4609_s2 + $0x28] sm:$0xff]  ;;  %v91_v16 = vand.u32 7, %v83_v10  ;;  %v84_v17 = vadd.s32 8, %v83_v10  ;;  %v147_v18 = vld [vmem:[%s4610_s3] sm:$0xff]  ;;  %v85_v20 = vadd.s32 16, %v83_v10 }
   0x5   :  { %3433 = vmatprep.subr.bf16.mxu0 %v3432_v7  ;;  %v148_v19 = vld [vmem:[%s4610_s3 + $0x8] sm:$0xff]  ;;  %v3440_v21 = vpack.c.bf16 %v74_v14, %v73_v13 }
   0x6   :  { %3435 = vmatpush3.bf16.msra.mxu0 %v3432_v7  ;;  %55 = vperm.xlu1 %3644, %v42_v6   ;;  %v3428_v22 = vpack.c.bf16 %v148_v19, %v147_v18  ;;  %vm135_vm1 = vcmp.eq.s32.totalorder %v91_v16, %v3974_v15  ;;  %v98_v23 = vand.u32 7, %v84_v17 }
   0x7   :  { %49 = vperm.xlu0 %3643, %v40_v11  }
   0x8   :  { %16 = vsyncpa [#allocation3], 0  ;;  %3437 = vmatprep.subr.bf16.mxu0 %v3436_v12  ;;  %v75_v24 = vld [vmem:[%s4609_s2 + $0x30] sm:$0xff]  ;;  %v76_v25 = vld [vmem:[%s4609_s2 + $0x38] sm:$0xff]  ;;  %v3878_v26 = vmov 0.0   ;;  %v105_v28 = vand.u32 7, %v85_v20  ;;  %3429 = vmatprep.subr.bf16.mxu1 %v3428_v22  ;;  %vm136_vm2 = vcmp.eq.s32.totalorder %v98_v23, %v3974_v15 }
   0x9   :  { %v2817_v27 = vsel %vm135_vm1, 1.0, %v3878_v26  ;;  %v86_v29 = vadd.s32 24, %v83_v10  ;;  %3431 = vmatpush3.bf16.msra.mxu1 %v3428_v22  ;;  %v2818_v30 = vsel %vm136_vm2, 1.0, %v3878_v26  ;;  %v3444_v32 = vpack.c.bf16 %v76_v25, %v75_v24  ;;  %v77_v34 = vld [vmem:[%s4609_s2 + $0x40] sm:$0xff]  ;;  %v78_v35 = vld [vmem:[%s4609_s2 + $0x48] sm:$0xff]  ;;  %v79_v38 = vld [vmem:[%s4609_s2 + $0x50] sm:$0xff] }
   0xa   :  { %3133 = vmatprep.mubr.msk.f32.mxu1 %vm149_vm0, %v2817_v27  ;;  %3439 = vmatpush3.bf16.msra.mxu0 %v3436_v12  ;;  %vm137_vm3 = vcmp.eq.s32.totalorder %v105_v28, %v3974_v15  ;;  %v3448_v37 = vpack.c.bf16 %v78_v35, %v77_v34  ;;  %v80_v39 = vld [vmem:[%s4609_s2 + $0x58] sm:$0xff]  ;;  %v81_v41 = vld [vmem:[%s4609_s2 + $0x60] sm:$0xf]  ;;  %vm260_vm5 = vcmask 1043456   ;;  %vm247_vm6 = vcmask 818176   ;;  %v436_v23 = vld [vmem:[%s4611_s4 + $0x8] sm:$0xff] }
   0xb   :  { %v112_v31 = vand.u32 7, %v86_v29  ;;  %3441 = vmatprep.subr.bf16.mxu0 %v3440_v21  ;;  %v2819_v33 = vsel %vm137_vm3, 1.0, %v3878_v26  ;;  %v3452_v40 = vpack.c.bf16 %v80_v39, %v79_v38  ;;  %vm351_vm11 = vcmask 261120   ;;  %v435_v22 = vld [vmem:[%s4611_s4] sm:$0xff]  ;;  %v437_v25 = vld [vmem:[%s4611_s4 + $0x10] sm:$0xff]  ;;  %v438_v27 = vld [vmem:[%s4611_s4 + $0x18] sm:$0xff] }
   0xc   :  { %3134 = vmatmul.mubr.msk.f32.vlgmr.msra.gmra.mrb[0].mxu1 %vm149_vm0, %v2818_v30  ;;  %v3456_v24 = vpack.c.bf16 %v436_v23, %v435_v22  ;;  %v3460_v28 = vpack.c.bf16 %v438_v27, %v437_v25  ;;  %s3879_s26 = smov 112   ;;  %s3880_s27 = smov 96   ;;  %vm4087_vm12 = vmpackc.low %vm149_vm0, %vm149_vm0  ;;  %vm722_vm13 = vcmask 523264   ;;  %vm3882_vm14 = vmmov 0  }
   0xd   :  { %vm138_vm4 = vcmp.eq.s32.totalorder %v112_v31, %v3974_v15  ;;  %3136 = vmatprep.mubr.msk.f32.mxu1 %vm149_vm0, %v2819_v33  ;;  %s3881_s23 = smov 64   ;;  %vm2717_vm15 = vcmask 1041409  }
   0xe   :  { %3443 = vmatpush3.bf16.msra.mxu0 %v3440_v21  ;;  %v2820_v36 = vsel %vm138_vm4, 1.0, %v3878_v26  ;;  %3457 = vmatprep.subr.bf16.mxu1 %v3456_v24 }
   0xf   :  { %3445 = vmatprep.subr.bf16.mxu0 %v3444_v32  ;;  %3459 = vmatpush3.bf16.msra.mxu1 %v3456_v24 }
  0x10   :  { %3137 = vmatmul.mubr.msk.f32.gmra.mrb[2].mxu1 %vm149_vm0, %v2820_v36  ;;  %3461 = vmatprep.subr.bf16.mxu1 %v3460_v28 }
  0x12   :  { %3447 = vmatpush3.bf16.msra.mxu0 %v3444_v32 }
  0x13   :  { %3449 = vmatprep.subr.bf16.mxu0 %v3448_v37  ;;  %3463 = vmatpush3.bf16.msra.mxu1 %v3460_v28 }
  0x16   :  { %3451 = vmatpush3.bf16.msra.mxu0 %v3448_v37 }
  0x17   :  { %3453 = vmatprep.subr.bf16.mxu0 %v3452_v40 }
  0x1a   :  { %3455 = vmatpush3.bf16.msra.mxu0 %v3452_v40 }
  0x1b   :  { %3163 = vmatprep.subr.msk.mxu0 %vm260_vm5, %v81_v41 }
  0x1e   :  { %3164 = vmatpush3.msk.msra.mxu0 %vm260_vm5, %v81_v41 }
  0x81   :  { %v53_v42 = vpop.permute.xlu1 %52  ;;  %v47_v43 = vpop.permute.xlu0 %46 }
  0x82   :  { %vm57_vm7 = vcmp.eq.s32.totalorder %v47_v43, %v3974_v15  ;;  %vm59_vm8 = vcmp.eq.s32.totalorder %v53_v42, %v3974_v15  ;;  %v2830_v42 = vld [vmem:[%s4617_s10] ss:$0 sm:$0xff] }
  0x83   :  { %v2813_v44 = vsel %vm57_vm7, 1.0, %v3878_v26  ;;  %v2815_v47 = vsel %vm59_vm8, 1.0, %v3878_v26 }
  0x84   :  { %3165 = vmatprep.mubr.msk.f32.mxu0 %vm247_vm6, %v2813_v44 }
  0x85   :  { %v56_v45 = vpop.permute.xlu1 %55 }
  0x86   :  { %v50_v46 = vpop.permute.xlu0 %49  ;;  %vm60_vm10 = vcmp.eq.s32.totalorder %v56_v45, %v3974_v15 }
  0x87   :  { %vm58_vm9 = vcmp.eq.s32.totalorder %v50_v46, %v3974_v15  ;;  %v2816_v49 = vsel %vm60_vm10, 1.0, %v3878_v26  ;;  %v2831_v46 = vld [vmem:[%s4617_s10 + $0x1] ss:$0 sm:$0xff] }
  0x88   :  { %v2814_v48 = vsel %vm58_vm9, 1.0, %v3878_v26 }
  0x89   :  { %3166 = vmatmul.mubr.msk.f32.vlgmr.msra.gmra.mrb[0].mxu0 %vm247_vm6, %v2814_v48 }
  0x8a   :  { %3168 = vmatprep.mubr.msk.f32.mxu0 %vm247_vm6, %v2815_v47 }
  0x8d   :  { %3169 = vmatmul.mubr.msk.f32.gmra.mrb[2].mxu0 %vm247_vm6, %v2816_v49 }
  0xdf   :  { %v3135_v50 = vpop.f32.mrb[0].mxu1 }
  0xe0   :  { %v228_v51 = vpop.f32.mrb[1].mxu1 }
  0xe3   :  { %v3138_v52 = vpop.f32.mrb[2].mxu1 }
  0xe4   :  { %v238_v53 = vpop.f32.mrb[3].mxu1 }
 0x15c   :  { %v3167_v54 = vpop.f32.mrb[0].mxu0 }
 0x15d   :  { %v336_v55 = vadd.f32 %v3167_v54, %v3135_v50  ;;  %v330_v56 = vpop.f32.mrb[1].mxu0 }
 0x15e   :  { %v331_v57 = vadd.f32 %v330_v56, %v228_v51 }
 0x15f   :  { %v355_v58 = vsel %vm351_vm11, %v336_v55, 0.0 }
 0x160   :  { %356 = vadd.xlane.f32.xlu1 %v355_v58  ;;  %v3170_v59 = vpop.f32.mrb[2].mxu0  ;;  %v352_v60 = vsel %vm351_vm11, %v331_v57, 0.0 }
 0x161   :  { %v346_v61 = vadd.f32 %v3170_v59, %v3138_v52  ;;  %v340_v62 = vpop.f32.mrb[3].mxu0  ;;  %353 = vadd.xlane.f32.xlu0 %v352_v60  ;;  %v2832_v59 = vld [vmem:[%s4612_s5] ss:$0 sm:$0xff] }
 0x162   :  { %v341_v63 = vadd.f32 %v340_v62, %v238_v53 }
 0x163   :  { %v361_v1 = vsel %vm351_vm11, %v346_v61, 0.0 }
 0x164   :  { %v358_v0 = vsel %vm351_vm11, %v341_v63, 0.0 }
 0x165   :  { %359 = vadd.xlane.f32.xlu0 %v358_v0 }
 0x169   :  { %362 = vadd.xlane.f32.xlu0 %v361_v1 }
 0x1ed   :  { %v357_v2 = vpop.xlane.xlu1 %356 }
 0x1ee   :  { %v366_v3 = vmul.f32 0.03125, %v357_v2  ;;  %v354_v4 = vpop.xlane.xlu0 %353 }
 0x1ef   :  { %v365_v5 = vmul.f32 0.03125, %v354_v4 }
 0x1f0   :  { %v370_v6 = vsub.f32 %v336_v55, %v366_v3 }
 0x1f1   :  { %v369_v7 = vsub.f32 %v331_v57, %v365_v5 }
 0x1f2   :  { %v360_v8 = vpop.xlane.xlu0 %359  ;;  %v374_v9 = vmul.f32 %v370_v6, %v370_v6 }
 0x1f3   :  { %v367_v10 = vmul.f32 0.03125, %v360_v8  ;;  %v373_v11 = vmul.f32 %v369_v7, %v369_v7 }
 0x1f4   :  { %v380_v12 = vsel %vm351_vm11, %v374_v9, 0.0 }
 0x1f5   :  { %v371_v13 = vsub.f32 %v341_v63, %v367_v10  ;;  %381 = vadd.xlane.f32.xlu0 %v380_v12  ;;  %v377_v14 = vsel %vm351_vm11, %v373_v11, 0.0  ;;  %v3845_v12 = vld [vmem:[%s4608_s1 + $0x8] sm:$0xff] }
 0x1f6   :  { %378 = vadd.xlane.f32.xlu1 %v377_v14  ;;  %v363_v15 = vpop.xlane.xlu0 %362 }
 0x1f7   :  { %v368_v16 = vmul.f32 0.03125, %v363_v15  ;;  %v375_v17 = vmul.f32 %v371_v13, %v371_v13 }
 0x1f9   :  { %v372_v18 = vsub.f32 %v346_v61, %v368_v16  ;;  %v383_v19 = vsel %vm351_vm11, %v375_v17, 0.0 }
 0x1fa   :  { %384 = vadd.xlane.f32.xlu1 %v383_v19 }
 0x1fb   :  { %v376_v20 = vmul.f32 %v372_v18, %v372_v18 }
 0x1fd   :  { %v386_v21 = vsel %vm351_vm11, %v376_v20, 0.0 }
 0x1fe   :  { %387 = vadd.xlane.f32.xlu0 %v386_v21 }
 0x282   :  { %v382_v29 = vpop.xlane.xlu0 %381 }
 0x283   :  { %v390_v30 = vmul.f32 0.03125, %v382_v29  ;;  %v379_v31 = vpop.xlane.xlu1 %378 }
 0x284   :  { %v389_v32 = vmul.f32 0.03125, %v379_v31  ;;  %v422_v31 = vld [vmem:[%s4608_s1 + $0x8] sm:$0xff] }
 0x285   :  { %v394_v33 = vadd.f32 1e-12, %v390_v30 }
 0x286   :  { %v393_v34 = vadd.f32 1e-12, %v389_v32 }
 0x287   :  { %3725 = vrsqrt.f32 %v394_v33  ;;  %v385_v35 = vpop.xlane.xlu1 %384 }
 0x288   :  { %3727 = vrsqrt.f32 %v393_v34  ;;  %v391_v36 = vmul.f32 0.03125, %v385_v35  ;;  %v421_v34 = vld [vmem:[%s4608_s1] sm:$0xff] }
 0x28a   :  { %v395_v37 = vadd.f32 1e-12, %v391_v36 }
 0x28b   :  { %v388_v38 = vpop.xlane.xlu0 %387 }
 0x28c   :  { %3729 = vrsqrt.f32 %v395_v37  ;;  %v392_v39 = vmul.f32 0.03125, %v388_v38 }
 0x28e   :  { %v396_v40 = vadd.f32 1e-12, %v392_v39 }
 0x290   :  { %3731 = vrsqrt.f32 %v396_v40 }
 0x291   :  { %v3726_v41 = vpop.eup %3725 }
 0x292   :  { %v3728_v43 = vpop.eup %3727  ;;  %v402_v44 = vmul.f32 %v3726_v41, %v370_v6 }
 0x293   :  { %v401_v45 = vmul.f32 %v3728_v43, %v369_v7 }
 0x294   :  { %v410_v47 = vmul.f32 %v2830_v42, %v402_v44 }
 0x295   :  { %v409_v48 = vmul.f32 %v2830_v42, %v401_v45  ;;  %v424_v45 = vld [vmem:[%s4608_s1 + $0x18] sm:$0xff] }
 0x296   :  { %v3730_v49 = vpop.eup %3729  ;;  %v4051_v52 = vadd.f32 %v2831_v46, %v410_v47 }
 0x297   :  { %v4049_v50 = vadd.f32 %v2831_v46, %v409_v48  ;;  %v403_v51 = vmul.f32 %v3730_v49, %v371_v13 }
 0x299   :  { %3179 = vmatprep.mubr.msk.f32.mxu1 %vm351_vm11, %v4049_v50  ;;  %v411_v53 = vmul.f32 %v2830_v42, %v403_v51  ;;  %v425_v51 = vld [vmem:[%s4608_s1 + $0x20] sm:$0xff] }
 0x29a   :  { %v3732_v54 = vpop.eup %3731  ;;  %3180 = vmatmul.mubr.msk.f32.vlgmr.msra.gmra.mrb[4].mxu1 %vm351_vm11, %v4051_v52 }
 0x29b   :  { %v4057_v55 = vadd.f32 %v2831_v46, %v411_v53  ;;  %v404_v56 = vmul.f32 %v3732_v54, %v372_v18 }
 0x29d   :  { %3182 = vmatprep.mubr.msk.f32.mxu1 %vm351_vm11, %v4057_v55  ;;  %v412_v57 = vmul.f32 %v2830_v42, %v404_v56  ;;  %v423_v42 = vld [vmem:[%s4608_s1 + $0x10] sm:$0xff] }
 0x29f   :  { %v4061_v58 = vadd.f32 %v2831_v46, %v412_v57  ;;  %v426_v57 = vld [vmem:[%s4608_s1 + $0x28] sm:$0xff] }
 0x2a1   :  { %3183 = vmatmul.mubr.msk.f32.gmra.mrb[6].mxu1 %vm351_vm11, %v4061_v58 }
 0x36d   :  { %v3181_v60 = vpop.f32.mrb[4].mxu1 }
 0x36e   :  { %v528_v61 = vadd.f32 %v3181_v60, %v2832_v59  ;;  %v522_v62 = vpop.f32.mrb[5].mxu1 }
 0x36f   :  { %v523_v63 = vadd.f32 %v2832_v59, %v522_v62 }
 0x370   :  { %547 = vrot.lane.b32.xlu0 %v528_v61, %s3879_s26 }
 0x371   :  { %545 = vrot.lane.b32.xlu1 %v523_v63, %s3879_s26  ;;  %3201 = vmatprep.mubr.msk.f32.mxu1 %vm149_vm0, %v523_v63  ;;  %v4071_v0 = vpack.i.bf16 %v528_v61, %v523_v63  ;;  %v427_v63 = vld [vmem:[%s4608_s1 + $0x30] sm:$0xff] }
 0x374   :  { %3646 = vrot.lane.b32.xlu0 %v4071_v0, %s3880_s27  ;;  %v3184_v1 = vpop.f32.mrb[6].mxu1 }
 0x375   :  { %v532_v2 = vpop.f32.mrb[7].mxu1  ;;  %v538_v4 = vadd.f32 %v3184_v1, %v2832_v59 }
 0x376   :  { %v533_v3 = vadd.f32 %v2832_v59, %v532_v2 }
 0x378   :  { %549 = vrot.lane.b32.xlu1 %v533_v3, %s3879_s26  ;;  %v4077_v5 = vpack.i.bf16 %v538_v4, %v533_v3 }
 0x37c   :  { %551 = vrot.lane.b32.xlu1 %v538_v4, %s3879_s26 }
 0x380   :  { %3651 = vrot.lane.b32.xlu1 %v4077_v5, %s3880_s27 }
 0x3e2   :  { %v548_v6 = vpop.permute.xlu0 %547 }
 0x3e3   :  { %v546_v7 = vpop.permute.xlu1 %545 }
 0x3e4   :  { %v4081_v8 = vpack.i.bf16 %v548_v6, %v546_v7 }
 0x3e6   :  { %3656 = vrot.lane.b32.xlu0 %v4081_v8, %s3880_s27  ;;  %v3647_v9 = vpop.permute.xlu0 %3646 }
 0x3e7   :  { %v3649_v10 = vunpack.i.h.bf16 %v3647_v9  ;;  %v3648_v11 = vunpack.i.l.bf16 %v3647_v9 }
 0x3e9   :  { %v3464_v13 = vpack.c.bf16 %v3649_v10, %v3648_v11 }
 0x3ea   :  { %v550_v14 = vpop.permute.xlu1 %549 }
 0x3eb   :  { %3466 = vmatprep.subr.msk.bf16.mxu1 %vm4087_vm12, %v3464_v13 }
 0x3ec   :  { %3469 = vmatpush3.bf16.xpose.msk.msra.mxu1 %vm4087_vm12, %v3464_v13 }
 0x3ee   :  { %v552_v15 = vpop.permute.xlu1 %551 }
 0x3ef   :  { %v4095_v16 = vpack.i.bf16 %v552_v15, %v550_v14 }
 0x3f1   :  { %3661 = vrot.lane.b32.xlu1 %v4095_v16, %s3880_s27 }
 0x3f2   :  { %v3652_v17 = vpop.permute.xlu1 %3651 }
 0x3f3   :  { %v3654_v18 = vunpack.i.h.bf16 %v3652_v17  ;;  %v3653_v19 = vunpack.i.l.bf16 %v3652_v17 }
 0x3f5   :  { %v3470_v20 = vpack.c.bf16 %v3654_v18, %v3653_v19 }
 0x3f7   :  { %3472 = vmatprep.subr.msk.bf16.mxu1 %vm4087_vm12, %v3470_v20 }
 0x3f8   :  { %3475 = vmatpush3.bf16.xpose.msk.msra.mxu1 %vm4087_vm12, %v3470_v20 }
 0x458   :  { %v3657_v21 = vpop.permute.xlu0 %3656 }
 0x459   :  { %v3659_v22 = vunpack.i.h.bf16 %v3657_v21  ;;  %v3658_v23 = vunpack.i.l.bf16 %v3657_v21 }
 0x45b   :  { %v3476_v24 = vpack.c.bf16 %v3659_v22, %v3658_v23 }
 0x45d   :  { %3478 = vmatprep.subr.msk.bf16.mxu1 %vm4087_vm12, %v3476_v24 }
 0x45e   :  { %3481 = vmatpush3.bf16.xpose.msk.msra.mxu1 %vm4087_vm12, %v3476_v24 }
 0x463   :  { %v3662_v25 = vpop.permute.xlu1 %3661 }
 0x464   :  { %v3664_v27 = vunpack.i.h.bf16 %v3662_v25  ;;  %v3663_v28 = vunpack.i.l.bf16 %v3662_v25 }
 0x466   :  { %v3482_v29 = vpack.c.bf16 %v3664_v27, %v3663_v28 }
 0x468   :  { %3484 = vmatprep.subr.msk.bf16.mxu1 %vm4087_vm12, %v3482_v29 }
 0x469   :  { %3487 = vmatpush3.bf16.xpose.msk.msra.mxu1 %vm4087_vm12, %v3482_v29 }
 0x470   :  { %3202 = vmatmul.mubr.msk.f32.vlgmr.msra.gmra.mrb[8].mxu1 %vm149_vm0, %v528_v61 }
 0x471   :  { %3204 = vmatprep.mubr.msk.f32.mxu1 %vm149_vm0, %v533_v3 }
 0x474   :  { %3205 = vmatmul.mubr.msk.f32.gmra.mrb[10].mxu1 %vm149_vm0, %v538_v4 }
 0x475   :  { %3207 = vmatprep.mubr.msk.f32.mxu1 %vm149_vm0, %v546_v7 }
 0x478   :  { %3208 = vmatmul.mubr.msk.f32.gmra.mrb[12].mxu1 %vm149_vm0, %v548_v6  ;;  %v428_v6 = vld [vmem:[%s4608_s1 + $0x38] sm:$0xff] }
 0x479   :  { %3210 = vmatprep.mubr.msk.f32.mxu1 %vm149_vm0, %v550_v14 }
 0x47c   :  { %3211 = vmatmul.mubr.msk.f32.gmra.mrb[14].mxu1 %vm149_vm0, %v552_v15 }
 0x543   :  { %v3203_v30 = vpop.f32.mrb[8].mxu1 }
 0x544   :  { %v707_v32 = vmul.f32 0.25, %v3203_v30  ;;  %v667_v33 = vpop.f32.mrb[9].mxu1 }
 0x545   :  { %v706_v35 = vmul.f32 0.25, %v667_v33 }
 0x546   :  { %v715_v36 = vadd.f32 %v707_v32, %v422_v31 }
 0x547   :  { %v3206_v37 = vpop.f32.mrb[10].mxu1  ;;  %v714_v38 = vadd.f32 %v706_v35, %v421_v34 }
 0x548   :  { %v709_v39 = vmul.f32 0.25, %v3206_v37  ;;  %v677_v40 = vpop.f32.mrb[11].mxu1  ;;  %v726_v41 = vsel %vm722_vm13, %v715_v36, -inf }
 0x549   :  { %v708_v43 = vmul.f32 0.25, %v677_v40  ;;  %727 = vmax.xlane.f32.xlu1 %v726_v41  ;;  %v723_v44 = vsel %vm722_vm13, %v714_v38, -inf }
 0x54a   :  { %724 = vmax.xlane.f32.xlu0 %v723_v44  ;;  %v717_v49 = vadd.f32 %v709_v39, %v424_v45 }
 0x54b   :  { %v3209_v46 = vpop.f32.mrb[12].mxu1  ;;  %v716_v47 = vadd.f32 %v708_v43, %v423_v42 }
 0x54c   :  { %v687_v48 = vpop.f32.mrb[13].mxu1  ;;  %v711_v53 = vmul.f32 0.25, %v3209_v46  ;;  %v732_v62 = vsel %vm722_vm13, %v717_v49, -inf }
 0x54d   :  { %v710_v54 = vmul.f32 0.25, %v687_v48  ;;  %v729_v56 = vsel %vm722_vm13, %v716_v47, -inf }
 0x54e   :  { %730 = vmax.xlane.f32.xlu0 %v729_v56  ;;  %v719_v4 = vadd.f32 %v711_v53, %v426_v57 }
 0x54f   :  { %v3212_v59 = vpop.f32.mrb[14].mxu1  ;;  %v718_v60 = vadd.f32 %v710_v54, %v425_v51 }
 0x550   :  { %v697_v61 = vpop.f32.mrb[15].mxu1  ;;  %v713_v1 = vmul.f32 0.25, %v3212_v59  ;;  %v738_v9 = vsel %vm722_vm13, %v719_v4, -inf }
 0x551   :  { %v712_v2 = vmul.f32 0.25, %v697_v61  ;;  %v735_v3 = vsel %vm722_vm13, %v718_v60, -inf }
 0x552   :  { %733 = vmax.xlane.f32.xlu0 %v732_v62  ;;  %736 = vmax.xlane.f32.xlu1 %v735_v3  ;;  %v721_v11 = vadd.f32 %v713_v1, %v428_v6  ;;  %v964_v3 = vld [vmem:[%s4613_s6] sm:$0xff] }
 0x553   :  { %v720_v7 = vadd.f32 %v712_v2, %v427_v63 }
 0x554   :  { %v744_v13 = vsel %vm722_vm13, %v721_v11, -inf }
 0x555   :  { %v741_v10 = vsel %vm722_vm13, %v720_v7, -inf }
 0x556   :  { %739 = vmax.xlane.f32.xlu0 %v738_v9  ;;  %742 = vmax.xlane.f32.xlu1 %v741_v10 }
 0x55a   :  { %745 = vmax.xlane.f32.xlu0 %v744_v13 }
 0x567   :  { %3666 = vrot.lane.b32.xlu1 %v4071_v0, %s3881_s23 }
 0x570   :  { %3671 = vrot.lane.b32.xlu0 %v4077_v5, %s3881_s23 }
 0x5d6   :  { %v728_v14 = vpop.xlane.xlu1 %727 }
 0x5d7   :  { %v748_v15 = vsub.f32 %v715_v36, %v728_v14  ;;  %v725_v17 = vpop.xlane.xlu0 %724 }
 0x5d8   :  { %v747_v18 = vsub.f32 %v714_v38, %v725_v17 }
 0x5d9   :  { %v757_v19 = vmul.f32 1.442695, %v748_v15 }
 0x5da   :  { %v755_v20 = vmul.f32 1.442695, %v747_v18 }
 0x5db   :  { %3733 = vpow2.f32 %v757_v19  ;;  %v731_v21 = vpop.xlane.xlu0 %730 }
 0x5dc   :  { %3735 = vpow2.f32 %v755_v20  ;;  %v749_v22 = vsub.f32 %v716_v47, %v731_v21 }
 0x5de   :  { %v759_v23 = vmul.f32 1.442695, %v749_v22 }
 0x5df   :  { %v734_v24 = vpop.xlane.xlu0 %733  ;;  %v737_v25 = vpop.xlane.xlu1 %736 }
 0x5e0   :  { %3737 = vpow2.f32 %v759_v23  ;;  %v750_v27 = vsub.f32 %v717_v49, %v734_v24  ;;  %v751_v28 = vsub.f32 %v718_v60, %v737_v25 }
 0x5e2   :  { %v761_v0 = vmul.f32 1.442695, %v750_v27  ;;  %v763_v29 = vmul.f32 1.442695, %v751_v28 }
 0x5e3   :  { %v740_v30 = vpop.xlane.xlu0 %739  ;;  %v743_v5 = vpop.xlane.xlu1 %742 }
 0x5e4   :  { %3739 = vpow2.f32 %v761_v0  ;;  %v752_v31 = vsub.f32 %v719_v4, %v740_v30  ;;  %v753_v32 = vsub.f32 %v720_v7, %v743_v5  ;;  %v965_v4 = vld [vmem:[%s4613_s6 + $0x8] sm:$0xff] }
 0x5e5   :  { %v4154_v33 = vpop.eup %3733  ;;  %3741 = vpow2.f32 %v763_v29  ;;  %v3504_v6 = vpack.c.bf16 %v965_v4, %v964_v3 }
 0x5e6   :  { %v3736_v34 = vpop.eup %3735  ;;  %v765_v35 = vmul.f32 1.442695, %v752_v31  ;;  %v767_v36 = vmul.f32 1.442695, %v753_v32  ;;  %v774_v37 = vsel %vm722_vm13, %v4154_v33, 0.0 }
 0x5e7   :  { %775 = vadd.xlane.f32.xlu0 %v774_v37  ;;  %v746_v38 = vpop.xlane.xlu0 %745  ;;  %v3667_v39 = vpop.permute.xlu1 %3666  ;;  %v771_v40 = vsel %vm722_vm13, %v3736_v34, 0.0  ;;  %3505 = vmatprep.subr.bf16.mxu1 %v3504_v6 }
 0x5e8   :  { %3743 = vpow2.f32 %v765_v35  ;;  %v754_v41 = vsub.f32 %v721_v11, %v746_v38  ;;  %v3669_v42 = vunpack.i.h.bf16 %v3667_v39  ;;  %v3668_v43 = vunpack.i.l.bf16 %v3667_v39  ;;  %772 = vadd.xlane.f32.xlu1 %v771_v40  ;;  %3507 = vmatpush3.bf16.msra.mxu1 %v3504_v6  ;;  %v2866_v39 = vld [vmem:[%s4613_s6 + $0x10] sm:$0xff]  ;;  %v2867_v40 = vld [vmem:[%s4613_s6 + $0x18] sm:$0xff] }
 0x5e9   :  { %3745 = vpow2.f32 %v767_v36 }
 0x5ea   :  { %v4159_v44 = vpop.eup %3737  ;;  %v769_v45 = vmul.f32 1.442695, %v754_v41  ;;  %v3488_v46 = vpack.c.bf16 %v3669_v42, %v3668_v43  ;;  %v3508_v41 = vpack.c.bf16 %v2867_v40, %v2866_v39 }
 0x5eb   :  { %v3672_v47 = vpop.permute.xlu0 %3671  ;;  %v777_v48 = vsel %vm722_vm13, %v4159_v44, 0.0 }
 0x5ec   :  { %3747 = vpow2.f32 %v769_v45  ;;  %v3674_v49 = vunpack.i.h.bf16 %v3672_v47  ;;  %v3673_v51 = vunpack.i.l.bf16 %v3672_v47  ;;  %778 = vadd.xlane.f32.xlu1 %v777_v48  ;;  %3489 = vmatprep.subr.bf16.mxu0 %v3488_v46 }
 0x5ed   :  { %3491 = vmatpush3.bf16.msra.mxu0 %v3488_v46  ;;  %3509 = vmatprep.subr.bf16.mxu1 %v3508_v41 }
 0x5ee   :  { %v4163_v53 = vpop.eup %3739  ;;  %v3492_v54 = vpack.c.bf16 %v3674_v49, %v3673_v51  ;;  %v2865_v51 = vld [vmem:[%s4617_s10 + $0x2] ss:$0 sm:$0xff] }
 0x5ef   :  { %v4165_v56 = vpop.eup %3741  ;;  %v780_v57 = vsel %vm722_vm13, %v4163_v53, 0.0 }
 0x5f0   :  { %781 = vadd.xlane.f32.xlu0 %v780_v57  ;;  %v783_v59 = vsel %vm722_vm13, %v4165_v56, 0.0  ;;  %3493 = vmatprep.subr.bf16.mxu0 %v3492_v54 }
 0x5f1   :  { %784 = vadd.xlane.f32.xlu1 %v783_v59  ;;  %3495 = vmatpush3.bf16.msra.mxu0 %v3492_v54 }
 0x5f2   :  { %v3744_v60 = vpop.eup %3743 }
 0x5f3   :  { %v3746_v61 = vpop.eup %3745  ;;  %v786_v62 = vsel %vm722_vm13, %v3744_v60, 0.0 }
 0x5f4   :  { %787 = vadd.xlane.f32.xlu0 %v786_v62  ;;  %v789_v63 = vsel %vm722_vm13, %v3746_v61, 0.0 }
 0x5f5   :  { %790 = vadd.xlane.f32.xlu1 %v789_v63 }
 0x5f6   :  { %v3748_v1 = vpop.eup %3747 }
 0x5f7   :  { %v792_v2 = vsel %vm722_vm13, %v3748_v1, 0.0 }
 0x5f8   :  { %793 = vadd.xlane.f32.xlu0 %v792_v2 }
 0x606   :  { %3676 = vrot.lane.b32.xlu1 %v4081_v8, %s3881_s23 }
 0x60e   :  { %3681 = vrot.lane.b32.xlu0 %v4095_v16, %s3881_s23 }
 0x674   :  { %v776_v9 = vpop.xlane.xlu0 %775 }
 0x675   :  { %v773_v7 = vpop.xlane.xlu1 %772 }
 0x676   :  { %3749 = vrcp.f32 %v773_v7 }
 0x677   :  { %3751 = vrcp.f32 %v776_v9 }
 0x679   :  { %v779_v10 = vpop.xlane.xlu1 %778 }
 0x67a   :  { %3753 = vrcp.f32 %v779_v10 }
 0x67d   :  { %v782_v11 = vpop.xlane.xlu0 %781 }
 0x67e   :  { %v785_v8 = vpop.xlane.xlu1 %784  ;;  %3755 = vrcp.f32 %v782_v11 }
 0x67f   :  { %3757 = vrcp.f32 %v785_v8 }
 0x680   :  { %v3750_v13 = vpop.eup %3749 }
 0x681   :  { %v788_v14 = vpop.xlane.xlu0 %787  ;;  %v803_v16 = vmul.f32 %v3750_v13, %v3736_v34  ;;  %v3752_v27 = vpop.eup %3751 }
 0x682   :  { %v791_v15 = vpop.xlane.xlu1 %790  ;;  %3759 = vrcp.f32 %v788_v14  ;;  %v804_v0 = vmul.f32 %v3752_v27, %v4154_v33  ;;  %v1247_v27 = vld [vmem:[%s4614_s7] sm:$0xff] }
 0x683   :  { %3229 = vmatprep.mubr.msk.f32.mxu0 %vm722_vm13, %v803_v16  ;;  %3761 = vrcp.f32 %v791_v15 }
 0x684   :  { %v3754_v28 = vpop.eup %3753 }
 0x685   :  { %v794_v17 = vpop.xlane.xlu0 %793  ;;  %v805_v30 = vmul.f32 %v3754_v28, %v4159_v44  ;;  %v1248_v28 = vld [vmem:[%s4614_s7 + $0x8] sm:$0xff] }
 0x686   :  { %v3677_v18 = vpop.permute.xlu1 %3676  ;;  %3763 = vrcp.f32 %v794_v17 }
 0x687   :  { %v3679_v19 = vunpack.i.h.bf16 %v3677_v18  ;;  %v3678_v20 = vunpack.i.l.bf16 %v3677_v18 }
 0x688   :  { %v3756_v29 = vpop.eup %3755 }
 0x689   :  { %v3496_v21 = vpack.c.bf16 %v3679_v19, %v3678_v20  ;;  %v3682_v22 = vpop.permute.xlu0 %3681  ;;  %v3758_v5 = vpop.eup %3757  ;;  %v806_v31 = vmul.f32 %v3756_v29, %v4163_v53  ;;  %v1249_v29 = vld [vmem:[%s4614_s7 + $0x10] sm:$0xff] }
 0x68a   :  { %v3684_v23 = vunpack.i.h.bf16 %v3682_v22  ;;  %v3683_v24 = vunpack.i.l.bf16 %v3682_v22  ;;  %v807_v34 = vmul.f32 %v3758_v5, %v4165_v56 }
 0x68b   :  { %3497 = vmatprep.subr.bf16.mxu0 %v3496_v21 }
 0x68c   :  { %v3500_v25 = vpack.c.bf16 %v3684_v23, %v3683_v24  ;;  %3499 = vmatpush3.bf16.msra.mxu0 %v3496_v21  ;;  %v3760_v32 = vpop.eup %3759 }
 0x68d   :  { %v3762_v35 = vpop.eup %3761  ;;  %v808_v36 = vmul.f32 %v3760_v32, %v3744_v60 }
 0x68e   :  { %3501 = vmatprep.subr.bf16.mxu0 %v3500_v25  ;;  %v809_v37 = vmul.f32 %v3762_v35, %v3746_v61 }
 0x690   :  { %3503 = vmatpush3.bf16.msra.mxu0 %v3500_v25  ;;  %v3764_v33 = vpop.eup %3763 }
 0x691   :  { %v810_v38 = vmul.f32 %v3764_v33, %v3748_v1 }
 0x693   :  { %3230 = vmatmul.mubr.msk.f32.vlgmr.msra.gmra.mrb[4].mxu0 %vm722_vm13, %v804_v0  ;;  %v3512_v0 = vpack.c.bf16 %v1248_v28, %v1247_v27 }
 0x694   :  { %3232 = vmatprep.mubr.msk.f32.mxu0 %vm722_vm13, %v805_v30  ;;  %v1250_v30 = vld [vmem:[%s4614_s7 + $0x18] sm:$0xff] }
 0x695   :  { %3513 = vmatprep.subr.bf16.mxu0 %v3512_v0  ;;  %v3516_v5 = vpack.c.bf16 %v1250_v30, %v1249_v29 }
 0x696   :  { %3515 = vmatpush3.bf16.msra.mxu0 %v3512_v0 }
 0x697   :  { %3233 = vmatmul.mubr.msk.f32.gmra.mrb[6].mxu0 %vm722_vm13, %v806_v31  ;;  %3517 = vmatprep.subr.bf16.mxu0 %v3516_v5 }
 0x698   :  { %3235 = vmatprep.mubr.msk.f32.mxu0 %vm722_vm13, %v807_v34 }
 0x69a   :  { %3519 = vmatpush3.bf16.msra.mxu0 %v3516_v5 }
 0x69b   :  { %3236 = vmatmul.mubr.msk.f32.gmra.mrb[8].mxu0 %vm722_vm13, %v808_v36 }
 0x69c   :  { %3238 = vmatprep.mubr.msk.f32.mxu0 %vm722_vm13, %v809_v37 }
 0x69f   :  { %3239 = vmatmul.mubr.msk.f32.gmra.mrb[10].mxu0 %vm722_vm13, %v810_v38 }
 0x766   :  { %v3231_v42 = vpop.f32.mrb[4].mxu0 }
 0x767   :  { %v925_v43 = vpop.f32.mrb[5].mxu0 }
 0x768   :  { %3245 = vmatprep.mubr.msk.f32.mxu1 %vm149_vm0, %v925_v43 }
 0x769   :  { %3246 = vmatmul.mubr.msk.f32.vlgmr.msra.gmra.mrb[16].mxu1 %vm149_vm0, %v3231_v42 }
 0x76a   :  { %v3234_v44 = vpop.f32.mrb[6].mxu0  ;;  %3511 = vmatpush3.bf16.msra.mxu1 %v3508_v41 }
 0x76b   :  { %v935_v45 = vpop.f32.mrb[7].mxu0 }
 0x76c   :  { %3248 = vmatprep.mubr.msk.f32.mxu1 %vm149_vm0, %v935_v45 }
 0x76d   :  { %3249 = vmatmul.mubr.msk.f32.gmra.mrb[18].mxu1 %vm149_vm0, %v3234_v44  ;;  %v2872_v44 = vld [vmem:[%s4617_s10 + $0x3] ss:$0 sm:$0xff] }
 0x76e   :  { %v3237_v46 = vpop.f32.mrb[8].mxu0 }
 0x76f   :  { %v945_v47 = vpop.f32.mrb[9].mxu0 }
 0x770   :  { %3255 = vmatprep.mubr.msk.f32.mxu1 %vm149_vm0, %v945_v47 }
 0x771   :  { %3256 = vmatmul.mubr.msk.f32.vlgmr.msra.gmra.mrb[16].mxu1 %vm149_vm0, %v3237_v46 }
 0x772   :  { %v3240_v48 = vpop.f32.mrb[10].mxu0 }
 0x773   :  { %v955_v49 = vpop.f32.mrb[11].mxu0 }
 0x774   :  { %3258 = vmatprep.mubr.msk.f32.mxu1 %vm149_vm0, %v955_v49 }
 0x775   :  { %3259 = vmatmul.mubr.msk.f32.gmra.mrb[18].mxu1 %vm149_vm0, %v3240_v48  ;;  %v2873_v48 = vld [vmem:[%s4617_s10 + $0x4] ss:$0 sm:$0xff] }
 0x844   :  { %v3257_v53 = vpop.f32.mrb[16].mxu1 }
 0x845   :  { %v3620_v54 = vadd.f32 %v3257_v53, %v2865_v51  ;;  %v1152_v56 = vpop.f32.mrb[17].mxu1 }
 0x846   :  { %v3621_v57 = vadd.f32 %v2865_v51, %v1152_v56 }
 0x847   :  { %v1176_v59 = vadd.f32 %v3620_v54, %v4051_v52 }
 0x848   :  { %v3260_v60 = vpop.f32.mrb[18].mxu1  ;;  %v1175_v61 = vadd.f32 %v3621_v57, %v4049_v50 }
 0x849   :  { %v3622_v62 = vadd.f32 %v3260_v60, %v2865_v51  ;;  %v1162_v63 = vpop.f32.mrb[19].mxu1  ;;  %v1182_v1 = vsel %vm351_vm11, %v1176_v59, 0.0 }
 0x84a   :  { %v3623_v2 = vadd.f32 %v2865_v51, %v1162_v63  ;;  %1183 = vadd.xlane.f32.xlu0 %v1182_v1  ;;  %v1179_v3 = vsel %vm351_vm11, %v1175_v61, 0.0 }
 0x84b   :  { %1180 = vadd.xlane.f32.xlu1 %v1179_v3  ;;  %v1178_v4 = vadd.f32 %v3622_v62, %v4061_v58  ;;  %v1390_v3 = vld [vmem:[%s4616_s9 + $0x8] sm:$0xff] }
 0x84c   :  { %v1177_v6 = vadd.f32 %v3623_v2, %v4057_v55  ;;  %v1389_v2 = vld [vmem:[%s4616_s9] sm:$0xff] }
 0x84d   :  { %v1188_v7 = vsel %vm351_vm11, %v1178_v4, 0.0 }
 0x84e   :  { %1189 = vadd.xlane.f32.xlu0 %v1188_v7  ;;  %v1185_v52 = vsel %vm351_vm11, %v1177_v6, 0.0  ;;  %v1392_v7 = vld [vmem:[%s4616_s9 + $0x18] sm:$0xff] }
 0x84f   :  { %1186 = vadd.xlane.f32.xlu1 %v1185_v52 }
 0x8d7   :  { %v1184_v50 = vpop.xlane.xlu0 %1183 }
 0x8d8   :  { %v1192_v9 = vmul.f32 0.03125, %v1184_v50  ;;  %v1181_v10 = vpop.xlane.xlu1 %1180  ;;  %v1393_v50 = vld [vmem:[%s4616_s9 + $0x20] sm:$0xff] }
 0x8d9   :  { %v1191_v11 = vmul.f32 0.03125, %v1181_v10 }
 0x8da   :  { %v1196_v8 = vsub.f32 %v1176_v59, %v1192_v9  ;;  %v1394_v9 = vld [vmem:[%s4616_s9 + $0x28] sm:$0xff] }
 0x8db   :  { %v1195_v13 = vsub.f32 %v1175_v61, %v1191_v11  ;;  %v1190_v14 = vpop.xlane.xlu0 %1189  ;;  %v3528_v10 = vpack.c.bf16 %v1394_v9, %v1393_v50  ;;  %v1395_v11 = vld [vmem:[%s4616_s9 + $0x30] sm:$0xff] }
 0x8dc   :  { %v1194_v16 = vmul.f32 0.03125, %v1190_v14  ;;  %v1187_v15 = vpop.xlane.xlu1 %1186  ;;  %v1200_v17 = vmul.f32 %v1196_v8, %v1196_v8  ;;  %v2874_v14 = vld [vmem:[%s4615_s8] ss:$0 sm:$0xff] }
 0x8dd   :  { %v1193_v18 = vmul.f32 0.03125, %v1187_v15  ;;  %v1199_v58 = vmul.f32 %v1195_v13, %v1195_v13 }
 0x8de   :  { %v1198_v19 = vsub.f32 %v1178_v4, %v1194_v16  ;;  %v1206_v55 = vsel %vm351_vm11, %v1200_v17, 0.0  ;;  %v3520_v4 = vpack.c.bf16 %v1390_v3, %v1389_v2 }
 0x8df   :  { %v1197_v20 = vsub.f32 %v1177_v6, %v1193_v18  ;;  %1207 = vadd.xlane.f32.xlu0 %v1206_v55  ;;  %v1203_v21 = vsel %vm351_vm11, %v1199_v58, 0.0  ;;  %v1391_v6 = vld [vmem:[%s4616_s9 + $0x10] sm:$0xff] }
 0x8e0   :  { %1204 = vadd.xlane.f32.xlu1 %v1203_v21  ;;  %v1202_v22 = vmul.f32 %v1198_v19, %v1198_v19  ;;  %3521 = vmatprep.subr.bf16.mxu0 %v3520_v4  ;;  %v3524_v52 = vpack.c.bf16 %v1392_v7, %v1391_v6 }
 0x8e1   :  { %v1201_v23 = vmul.f32 %v1197_v20, %v1197_v20 }
 0x8e2   :  { %v1212_v24 = vsel %vm351_vm11, %v1202_v22, 0.0 }
 0x8e3   :  { %1213 = vadd.xlane.f32.xlu0 %v1212_v24  ;;  %v1209_v25 = vsel %vm351_vm11, %v1201_v23, 0.0 }
 0x8e4   :  { %1210 = vadd.xlane.f32.xlu1 %v1209_v25 }
 0x96c   :  { %v1208_v31 = vpop.xlane.xlu0 %1207 }
 0x96d   :  { %v1216_v32 = vmul.f32 0.03125, %v1208_v31  ;;  %v1205_v34 = vpop.xlane.xlu1 %1204 }
 0x96e   :  { %v1215_v35 = vmul.f32 0.03125, %v1205_v34 }
 0x96f   :  { %v1220_v36 = vadd.f32 1e-12, %v1216_v32 }
 0x970   :  { %v1219_v33 = vadd.f32 1e-12, %v1215_v35  ;;  %v1214_v37 = vpop.xlane.xlu0 %1213 }
 0x971   :  { %3765 = vrsqrt.f32 %v1220_v36  ;;  %v1218_v38 = vmul.f32 0.03125, %v1214_v37  ;;  %v1211_v39 = vpop.xlane.xlu1 %1210 }
 0x972   :  { %3767 = vrsqrt.f32 %v1219_v33  ;;  %v1217_v40 = vmul.f32 0.03125, %v1211_v39 }
 0x973   :  { %v1222_v41 = vadd.f32 1e-12, %v1218_v38 }
 0x974   :  { %v1221_v42 = vadd.f32 1e-12, %v1217_v40 }
 0x975   :  { %3769 = vrsqrt.f32 %v1222_v41 }
 0x976   :  { %3771 = vrsqrt.f32 %v1221_v42 }
 0x97b   :  { %v3766_v43 = vpop.eup %3765 }
 0x97c   :  { %v3768_v45 = vpop.eup %3767  ;;  %v1228_v46 = vmul.f32 %v3766_v43, %v1196_v8  ;;  %v1396_v8 = vld [vmem:[%s4616_s9 + $0x38] sm:$0xff] }
 0x97d   :  { %v1227_v47 = vmul.f32 %v3768_v45, %v1195_v13  ;;  %v3532_v13 = vpack.c.bf16 %v1396_v8, %v1395_v11 }
 0x97e   :  { %v1236_v49 = vmul.f32 %v2872_v44, %v1228_v46 }
 0x97f   :  { %v3770_v51 = vpop.eup %3769  ;;  %v1235_v53 = vmul.f32 %v2872_v44, %v1227_v47 }
 0x980   :  { %v3772_v54 = vpop.eup %3771  ;;  %v1230_v56 = vmul.f32 %v3770_v51, %v1198_v19  ;;  %v4245_v60 = vadd.f32 %v2873_v48, %v1236_v49 }
 0x981   :  { %v4243_v57 = vadd.f32 %v2873_v48, %v1235_v53  ;;  %v1229_v59 = vmul.f32 %v3772_v54, %v1197_v20 }
 0x982   :  { %v1238_v61 = vmul.f32 %v2872_v44, %v1230_v56 }
 0x983   :  { %3269 = vmatprep.mubr.msk.f32.mxu0 %vm351_vm11, %v4243_v57  ;;  %v1237_v62 = vmul.f32 %v2872_v44, %v1229_v59 }
 0x984   :  { %3270 = vmatmul.mubr.msk.f32.vlgmr.msra.gmra.mrb[12].mxu0 %vm351_vm11, %v4245_v60  ;;  %v4253_v1 = vadd.f32 %v2873_v48, %v1238_v61 }
 0x985   :  { %v4251_v63 = vadd.f32 %v2873_v48, %v1237_v62  ;;  %3523 = vmatpush3.bf16.msra.mxu0 %v3520_v4  ;;  %v2879_v62 = vld [vmem:[%s4617_s10 + $0x5] ss:$0 sm:$0xff] }
 0x986   :  { %3525 = vmatprep.subr.bf16.mxu0 %v3524_v52 }
 0x987   :  { %3272 = vmatprep.mubr.msk.f32.mxu0 %vm351_vm11, %v4251_v63 }
 0x988   :  { %3273 = vmatmul.mubr.msk.f32.gmra.mrb[14].mxu0 %vm351_vm11, %v4253_v1 }
 0x989   :  { %3527 = vmatpush3.bf16.msra.mxu0 %v3524_v52 }
 0x98a   :  { %3529 = vmatprep.subr.bf16.mxu0 %v3528_v10 }
 0x98d   :  { %3531 = vmatpush3.bf16.msra.mxu0 %v3528_v10 }
 0x98e   :  { %3533 = vmatprep.subr.bf16.mxu0 %v3532_v13 }
 0x991   :  { %3535 = vmatpush3.bf16.msra.mxu0 %v3532_v13 }
 0xa57   :  { %v3271_v16 = vpop.f32.mrb[12].mxu0 }
 0xa58   :  { %v1340_v15 = vadd.f32 %v3271_v16, %v2874_v14  ;;  %v1334_v17 = vpop.f32.mrb[13].mxu0 }
 0xa59   :  { %v1335_v18 = vadd.f32 %v2874_v14, %v1334_v17 }
 0xa5a   :  { %v1358_v58 = vmul.f32 0.044715, %v1340_v15  ;;  %v1354_v45 = vmul.f32 0.5, %v1340_v15 }
 0xa5b   :  { %v1357_v19 = vmul.f32 0.044715, %v1335_v18  ;;  %v3274_v55 = vpop.f32.mrb[14].mxu0  ;;  %v1353_v43 = vmul.f32 0.5, %v1335_v18 }
 0xa5c   :  { %v1362_v20 = vmul.f32 %v1358_v58, %v1340_v15  ;;  %v1350_v21 = vadd.f32 %v3274_v55, %v2874_v14  ;;  %v1344_v22 = vpop.f32.mrb[15].mxu0 }
 0xa5d   :  { %v1361_v23 = vmul.f32 %v1357_v19, %v1335_v18  ;;  %v1345_v24 = vadd.f32 %v2874_v14, %v1344_v22 }
 0xa5e   :  { %v1366_v25 = vmul.f32 %v1362_v20, %v1340_v15  ;;  %v1360_v27 = vmul.f32 0.044715, %v1350_v21  ;;  %v1356_v56 = vmul.f32 0.5, %v1350_v21 }
 0xa5f   :  { %v1365_v28 = vmul.f32 %v1361_v23, %v1335_v18  ;;  %v1359_v0 = vmul.f32 0.044715, %v1345_v24  ;;  %v1355_v53 = vmul.f32 0.5, %v1345_v24 }
 0xa60   :  { %v1370_v29 = vadd.f32 %v1366_v25, %v1340_v15  ;;  %v1364_v30 = vmul.f32 %v1360_v27, %v1350_v21 }
 0xa61   :  { %v1369_v5 = vadd.f32 %v1365_v28, %v1335_v18  ;;  %v1363_v31 = vmul.f32 %v1359_v0, %v1345_v24 }
 0xa62   :  { %v1374_v32 = vmul.f32 0.7978846, %v1370_v29  ;;  %v1368_v34 = vmul.f32 %v1364_v30, %v1350_v21 }
 0xa63   :  { %v1367_v35 = vmul.f32 %v1363_v31, %v1345_v24  ;;  %v1373_v36 = vmul.f32 0.7978846, %v1369_v5  ;;  %v2886_v31 = vld [vmem:[%s4611_s4 + $0x20] sm:$0xff] }
 0xa64   :  { %3773 = vtanh.f32 %v1374_v32  ;;  %v1372_v33 = vadd.f32 %v1368_v34, %v1350_v21  ;;  %v2887_v32 = vld [vmem:[%s4611_s4 + $0x28] sm:$0xff] }
 0xa65   :  { %v1371_v37 = vadd.f32 %v1367_v35, %v1345_v24  ;;  %3775 = vtanh.f32 %v1373_v36  ;;  %v3536_v34 = vpack.c.bf16 %v2887_v32, %v2886_v31  ;;  %v2888_v35 = vld [vmem:[%s4611_s4 + $0x30] sm:$0xff]  ;;  %v2889_v36 = vld [vmem:[%s4611_s4 + $0x38] sm:$0xff] }
 0xa66   :  { %v1376_v38 = vmul.f32 0.7978846, %v1372_v33  ;;  %v3540_v33 = vpack.c.bf16 %v2889_v36, %v2888_v35 }
 0xa67   :  { %v1375_v39 = vmul.f32 0.7978846, %v1371_v37  ;;  %3537 = vmatprep.subr.bf16.mxu1 %v3536_v34 }
 0xa68   :  { %3777 = vtanh.f32 %v1376_v38  ;;  %3539 = vmatpush3.bf16.msra.mxu1 %v3536_v34 }
 0xa69   :  { %3779 = vtanh.f32 %v1375_v39  ;;  %3541 = vmatprep.subr.bf16.mxu1 %v3540_v33 }
 0xa6c   :  { %3543 = vmatpush3.bf16.msra.mxu1 %v3540_v33 }
 0xa6e   :  { %v3774_v40 = vpop.eup %3773 }
 0xa6f   :  { %v3776_v41 = vpop.eup %3775  ;;  %v1382_v42 = vadd.f32 1.0, %v3774_v40 }
 0xa70   :  { %v1381_v44 = vadd.f32 1.0, %v3776_v41 }
 0xa71   :  { %v1386_v49 = vmul.f32 %v1382_v42, %v1354_v45 }
 0xa72   :  { %v3778_v46 = vpop.eup %3777  ;;  %v1385_v47 = vmul.f32 %v1381_v44, %v1353_v43 }
 0xa73   :  { %v3780_v48 = vpop.eup %3779  ;;  %v1384_v51 = vadd.f32 1.0, %v3778_v46 }
 0xa74   :  { %3291 = vmatprep.mubr.msk.f32.mxu0 %vm722_vm13, %v1385_v47  ;;  %v1383_v54 = vadd.f32 1.0, %v3780_v48 }
 0xa75   :  { %3292 = vmatmul.mubr.msk.f32.vlgmr.msra.gmra.mrb[16].mxu0 %vm722_vm13, %v1386_v49  ;;  %v1388_v61 = vmul.f32 %v1384_v51, %v1356_v56  ;;  %v2884_v51 = vld [vmem:[%s4617_s10 + $0x6] ss:$0 sm:$0xff] }
 0xa76   :  { %v1387_v59 = vmul.f32 %v1383_v54, %v1355_v53 }
 0xa78   :  { %3294 = vmatprep.mubr.msk.f32.mxu0 %vm722_vm13, %v1387_v59  ;;  %v2885_v59 = vld [vmem:[%s4617_s10 + $0x7] ss:$0 sm:$0xff] }
 0xa79   :  { %3295 = vmatmul.mubr.msk.f32.gmra.mrb[18].mxu0 %vm722_vm13, %v1388_v61 }
 0xb48   :  { %v3293_v2 = vpop.f32.mrb[16].mxu0 }
 0xb49   :  { %v1485_v3 = vadd.f32 %v3293_v2, %v2879_v62  ;;  %v1479_v4 = vpop.f32.mrb[17].mxu0 }
 0xb4a   :  { %v1480_v6 = vadd.f32 %v2879_v62, %v1479_v4 }
 0xb4b   :  { %v1499_v7 = vadd.f32 %v1485_v3, %v4245_v60 }
 0xb4c   :  { %v3296_v52 = vpop.f32.mrb[18].mxu0  ;;  %v1498_v50 = vadd.f32 %v1480_v6, %v4243_v57 }
 0xb4d   :  { %v1495_v9 = vadd.f32 %v3296_v52, %v2879_v62  ;;  %v1489_v10 = vpop.f32.mrb[19].mxu0  ;;  %v1505_v11 = vsel %vm351_vm11, %v1499_v7, 0.0 }
 0xb4e   :  { %v1490_v8 = vadd.f32 %v2879_v62, %v1489_v10  ;;  %1506 = vadd.xlane.f32.xlu0 %v1505_v11  ;;  %v1502_v13 = vsel %vm351_vm11, %v1498_v50, 0.0 }
 0xb4f   :  { %1503 = vadd.xlane.f32.xlu1 %v1502_v13  ;;  %v1501_v14 = vadd.f32 %v1495_v9, %v4253_v1 }
 0xb50   :  { %v1500_v16 = vadd.f32 %v1490_v8, %v4251_v63  ;;  %v2890_v8 = vld [vmem:[%s4612_s5 + $0x1] ss:$0 sm:$0xff] }
 0xb51   :  { %v1511_v15 = vsel %vm351_vm11, %v1501_v14, 0.0 }
 0xb52   :  { %1512 = vadd.xlane.f32.xlu0 %v1511_v15  ;;  %v1508_v60 = vsel %vm351_vm11, %v1500_v16, 0.0 }
 0xb53   :  { %1509 = vadd.xlane.f32.xlu1 %v1508_v60 }
 0xbdb   :  { %v1507_v57 = vpop.xlane.xlu0 %1506 }
 0xbdc   :  { %v1515_v17 = vmul.f32 0.03125, %v1507_v57  ;;  %v1504_v18 = vpop.xlane.xlu1 %1503 }
 0xbdd   :  { %v1514_v58 = vmul.f32 0.03125, %v1504_v18 }
 0xbde   :  { %v1519_v19 = vsub.f32 %v1499_v7, %v1515_v17 }
 0xbdf   :  { %v1518_v55 = vsub.f32 %v1498_v50, %v1514_v58  ;;  %v1513_v20 = vpop.xlane.xlu0 %1512 }
 0xbe0   :  { %v1517_v21 = vmul.f32 0.03125, %v1513_v20  ;;  %v1510_v22 = vpop.xlane.xlu1 %1509  ;;  %v1523_v23 = vmul.f32 %v1519_v19, %v1519_v19 }
 0xbe1   :  { %v1516_v24 = vmul.f32 0.03125, %v1510_v22  ;;  %v1522_v1 = vmul.f32 %v1518_v55, %v1518_v55 }
 0xbe2   :  { %v1521_v25 = vsub.f32 %v1501_v14, %v1517_v21  ;;  %v1529_v63 = vsel %vm351_vm11, %v1523_v23, 0.0 }
 0xbe3   :  { %v1520_v27 = vsub.f32 %v1500_v16, %v1516_v24  ;;  %1530 = vadd.xlane.f32.xlu0 %v1529_v63  ;;  %v1526_v28 = vsel %vm351_vm11, %v1522_v1, 0.0 }
 0xbe4   :  { %1527 = vadd.xlane.f32.xlu1 %v1526_v28  ;;  %v1525_v0 = vmul.f32 %v1521_v25, %v1521_v25 }
 0xbe5   :  { %v1524_v29 = vmul.f32 %v1520_v27, %v1520_v27 }
 0xbe6   :  { %v1535_v30 = vsel %vm351_vm11, %v1525_v0, 0.0 }
 0xbe7   :  { %1536 = vadd.xlane.f32.xlu0 %v1535_v30  ;;  %v1532_v5 = vsel %vm351_vm11, %v1524_v29, 0.0 }
 0xbe8   :  { %1533 = vadd.xlane.f32.xlu1 %v1532_v5 }
 0xc70   :  { %v1531_v37 = vpop.xlane.xlu0 %1530 }
 0xc71   :  { %v1539_v38 = vmul.f32 0.03125, %v1531_v37  ;;  %v1528_v39 = vpop.xlane.xlu1 %1527 }
 0xc72   :  { %v1538_v40 = vmul.f32 0.03125, %v1528_v39 }
 0xc73   :  { %v1543_v41 = vadd.f32 1e-12, %v1539_v38 }
 0xc74   :  { %v1542_v42 = vadd.f32 1e-12, %v1538_v40  ;;  %v1537_v43 = vpop.xlane.xlu0 %1536 }
 0xc75   :  { %3781 = vrsqrt.f32 %v1543_v41  ;;  %v1541_v44 = vmul.f32 0.03125, %v1537_v43  ;;  %v1534_v45 = vpop.xlane.xlu1 %1533 }
 0xc76   :  { %3783 = vrsqrt.f32 %v1542_v42  ;;  %v1540_v46 = vmul.f32 0.03125, %v1534_v45 }
 0xc77   :  { %v1545_v47 = vadd.f32 1e-12, %v1541_v44  ;;  %v3846_v44 = vld [vmem:[%s4608_s1] sm:$0xff] }
 0xc78   :  { %v1544_v48 = vadd.f32 1e-12, %v1540_v46 }
 0xc79   :  { %3785 = vrsqrt.f32 %v1545_v47 }
 0xc7a   :  { %3787 = vrsqrt.f32 %v1544_v48 }
 0xc7f   :  { %v3782_v49 = vpop.eup %3781 }
 0xc80   :  { %v3784_v53 = vpop.eup %3783  ;;  %v1551_v54 = vmul.f32 %v3782_v49, %v1519_v19 }
 0xc81   :  { %v1550_v56 = vmul.f32 %v3784_v53, %v1518_v55 }
 0xc82   :  { %v1559_v61 = vmul.f32 %v2884_v51, %v1551_v54  ;;  %v3847_v54 = vld [vmem:[%s4608_s1 + $0x10] sm:$0xff] }
 0xc83   :  { %v3786_v62 = vpop.eup %3785  ;;  %v1558_v2 = vmul.f32 %v2884_v51, %v1550_v56 }
 0xc84   :  { %v3788_v3 = vpop.eup %3787  ;;  %v1553_v4 = vmul.f32 %v3786_v62, %v1521_v25  ;;  %v4325_v52 = vadd.f32 %v2885_v59, %v1559_v61  ;;  %v3848_v61 = vld [vmem:[%s4608_s1 + $0x18] sm:$0xff] }
 0xc85   :  { %v4323_v6 = vadd.f32 %v2885_v59, %v1558_v2  ;;  %v1552_v7 = vmul.f32 %v3788_v3, %v1520_v27 }
 0xc86   :  { %v1561_v50 = vmul.f32 %v2884_v51, %v1553_v4 }
 0xc87   :  { %3305 = vmatprep.mubr.msk.f32.mxu1 %vm351_vm11, %v4323_v6  ;;  %v1560_v9 = vmul.f32 %v2884_v51, %v1552_v7 }
 0xc88   :  { %3306 = vmatmul.mubr.msk.f32.vlgmr.msra.gmra.mrb[20].mxu1 %vm351_vm11, %v4325_v52  ;;  %v4333_v11 = vadd.f32 %v2885_v59, %v1561_v50  ;;  %v3849_v50 = vld [vmem:[%s4608_s1 + $0x20] sm:$0xff] }
 0xc89   :  { %v4331_v10 = vadd.f32 %v2885_v59, %v1560_v9 }
 0xc8b   :  { %3308 = vmatprep.mubr.msk.f32.mxu1 %vm351_vm11, %v4331_v10 }
 0xc8c   :  { %3309 = vmatmul.mubr.msk.f32.gmra.mrb[22].mxu1 %vm351_vm11, %v4333_v11 }
 0xd5b   :  { %v3307_v13 = vpop.f32.mrb[20].mxu1 }
 0xd5c   :  { %v1670_v14 = vadd.f32 %v3307_v13, %v2890_v8  ;;  %v1664_v16 = vpop.f32.mrb[21].mxu1 }
 0xd5d   :  { %v1665_v15 = vadd.f32 %v2890_v8, %v1664_v16 }
 0xd5e   :  { %1689 = vrot.lane.b32.xlu0 %v1670_v14, %s3879_s26 }
 0xd5f   :  { %1687 = vrot.lane.b32.xlu1 %v1665_v15, %s3879_s26  ;;  %v3310_v60 = vpop.f32.mrb[22].mxu1  ;;  %3327 = vmatprep.mubr.msk.f32.mxu1 %vm149_vm0, %v1665_v15  ;;  %v4345_v57 = vpack.i.bf16 %v1670_v14, %v1665_v15 }
 0xd60   :  { %v1674_v17 = vpop.f32.mrb[23].mxu1  ;;  %v1680_v58 = vadd.f32 %v3310_v60, %v2890_v8  ;;  %v3850_v60 = vld [vmem:[%s4608_s1 + $0x28] sm:$0xff] }
 0xd61   :  { %v1675_v18 = vadd.f32 %v2890_v8, %v1674_v17 }
 0xd62   :  { %3686 = vrot.lane.b32.xlu0 %v4345_v57, %s3880_s27 }
 0xd63   :  { %1691 = vrot.lane.b32.xlu1 %v1675_v18, %s3879_s26  ;;  %v4351_v19 = vpack.i.bf16 %v1680_v58, %v1675_v18 }
 0xd67   :  { %1693 = vrot.lane.b32.xlu1 %v1680_v58, %s3879_s26 }
 0xd6b   :  { %3691 = vrot.lane.b32.xlu1 %v4351_v19, %s3880_s27 }
 0xdd0   :  { %v1690_v55 = vpop.permute.xlu0 %1689 }
 0xdd1   :  { %v1688_v20 = vpop.permute.xlu1 %1687 }
 0xdd2   :  { %v4355_v21 = vpack.i.bf16 %v1690_v55, %v1688_v20 }
 0xdd4   :  { %v3687_v22 = vpop.permute.xlu0 %3686  ;;  %3696 = vrot.lane.b32.xlu0 %v4355_v21, %s3880_s27 }
 0xdd5   :  { %v3689_v23 = vunpack.i.h.bf16 %v3687_v22  ;;  %v3688_v24 = vunpack.i.l.bf16 %v3687_v22  ;;  %v1692_v1 = vpop.permute.xlu1 %1691  ;;  %v3852_v22 = vld [vmem:[%s4608_s1 + $0x38] sm:$0xff] }
 0xdd7   :  { %v3544_v25 = vpack.c.bf16 %v3689_v23, %v3688_v24 }
 0xdd9   :  { %3546 = vmatprep.subr.msk.bf16.mxu1 %vm4087_vm12, %v3544_v25  ;;  %v1694_v63 = vpop.permute.xlu1 %1693 }
 0xdda   :  { %v4361_v27 = vpack.i.bf16 %v1694_v63, %v1692_v1  ;;  %3549 = vmatpush3.bf16.xpose.msk.msra.mxu1 %vm4087_vm12, %v3544_v25 }
 0xddc   :  { %3701 = vrot.lane.b32.xlu1 %v4361_v27, %s3880_s27 }
 0xddd   :  { %v3692_v28 = vpop.permute.xlu1 %3691 }
 0xdde   :  { %v3694_v0 = vunpack.i.h.bf16 %v3692_v28  ;;  %v3693_v29 = vunpack.i.l.bf16 %v3692_v28 }
 0xde0   :  { %v3550_v30 = vpack.c.bf16 %v3694_v0, %v3693_v29 }
 0xde2   :  { %3552 = vmatprep.subr.msk.bf16.mxu1 %vm4087_vm12, %v3550_v30 }
 0xde3   :  { %3555 = vmatpush3.bf16.xpose.msk.msra.mxu1 %vm4087_vm12, %v3550_v30 }
 0xe46   :  { %v3697_v5 = vpop.permute.xlu0 %3696 }
 0xe47   :  { %v3699_v31 = vunpack.i.h.bf16 %v3697_v5  ;;  %v3698_v32 = vunpack.i.l.bf16 %v3697_v5 }
 0xe49   :  { %v3556_v34 = vpack.c.bf16 %v3699_v31, %v3698_v32 }
 0xe4b   :  { %3558 = vmatprep.subr.msk.bf16.mxu1 %vm4087_vm12, %v3556_v34 }
 0xe4c   :  { %3561 = vmatpush3.bf16.xpose.msk.msra.mxu1 %vm4087_vm12, %v3556_v34 }
 0xe4e   :  { %v3702_v35 = vpop.permute.xlu1 %3701 }
 0xe4f   :  { %v3704_v36 = vunpack.i.h.bf16 %v3702_v35  ;;  %v3703_v33 = vunpack.i.l.bf16 %v3702_v35 }
 0xe51   :  { %v3562_v37 = vpack.c.bf16 %v3704_v36, %v3703_v33 }
 0xe53   :  { %3564 = vmatprep.subr.msk.bf16.mxu1 %vm4087_vm12, %v3562_v37 }
 0xe54   :  { %3567 = vmatpush3.bf16.xpose.msk.msra.mxu1 %vm4087_vm12, %v3562_v37 }
 0xe5b   :  { %3328 = vmatmul.mubr.msk.f32.vlgmr.msra.gmra.mrb[24].mxu1 %vm149_vm0, %v1670_v14 }
 0xe5c   :  { %3330 = vmatprep.mubr.msk.f32.mxu1 %vm149_vm0, %v1675_v18  ;;  %v3851_v18 = vld [vmem:[%s4608_s1 + $0x30] sm:$0xff] }
 0xe5f   :  { %3331 = vmatmul.mubr.msk.f32.gmra.mrb[26].mxu1 %vm149_vm0, %v1680_v58 }
 0xe60   :  { %3333 = vmatprep.mubr.msk.f32.mxu1 %vm149_vm0, %v1688_v20 }
 0xe63   :  { %3334 = vmatmul.mubr.msk.f32.gmra.mrb[28].mxu1 %vm149_vm0, %v1690_v55 }
 0xe64   :  { %3336 = vmatprep.mubr.msk.f32.mxu1 %vm149_vm0, %v1692_v1 }
 0xe67   :  { %3337 = vmatmul.mubr.msk.f32.gmra.mrb[30].mxu1 %vm149_vm0, %v1694_v63 }
 0xf2e   :  { %v3329_v38 = vpop.f32.mrb[24].mxu1 }
 0xf2f   :  { %v1849_v39 = vmul.f32 0.25, %v3329_v38  ;;  %v1809_v40 = vpop.f32.mrb[25].mxu1 }
 0xf30   :  { %v1848_v41 = vmul.f32 0.25, %v1809_v40 }
 0xf31   :  { %v1857_v42 = vadd.f32 %v3845_v12, %v1849_v39 }
 0xf32   :  { %v3332_v43 = vpop.f32.mrb[26].mxu1  ;;  %v1856_v45 = vadd.f32 %v3846_v44, %v1848_v41 }
 0xf33   :  { %v1851_v46 = vmul.f32 0.25, %v3332_v43  ;;  %v1819_v47 = vpop.f32.mrb[27].mxu1  ;;  %v1867_v48 = vsel %vm722_vm13, %v1857_v42, -inf }
 0xf34   :  { %v1850_v49 = vmul.f32 0.25, %v1819_v47  ;;  %1868 = vmax.xlane.f32.xlu1 %v1867_v48  ;;  %v1864_v51 = vsel %vm722_vm13, %v1856_v45, -inf }
 0xf35   :  { %1865 = vmax.xlane.f32.xlu0 %v1864_v51  ;;  %v1859_v62 = vadd.f32 %v3848_v61, %v1851_v46 }
 0xf36   :  { %v3335_v53 = vpop.f32.mrb[28].mxu1  ;;  %v1858_v56 = vadd.f32 %v3847_v54, %v1850_v49 }
 0xf37   :  { %v1829_v59 = vpop.f32.mrb[29].mxu1  ;;  %v1853_v2 = vmul.f32 0.25, %v3335_v53  ;;  %v1873_v13 = vsel %vm722_vm13, %v1859_v62, -inf }
 0xf38   :  { %v1852_v3 = vmul.f32 0.25, %v1829_v59  ;;  %v1870_v4 = vsel %vm722_vm13, %v1858_v56, -inf }
 0xf39   :  { %1871 = vmax.xlane.f32.xlu0 %v1870_v4  ;;  %v1861_v17 = vadd.f32 %v3850_v60, %v1853_v2 }
 0xf3a   :  { %v3338_v7 = vpop.f32.mrb[30].mxu1  ;;  %v1860_v9 = vadd.f32 %v3849_v50, %v1852_v3 }
 0xf3b   :  { %v1839_v8 = vpop.f32.mrb[31].mxu1  ;;  %v1855_v14 = vmul.f32 0.25, %v3338_v7  ;;  %v1879_v55 = vsel %vm722_vm13, %v1861_v17, -inf }
 0xf3c   :  { %v1854_v16 = vmul.f32 0.25, %v1839_v8  ;;  %v1876_v15 = vsel %vm722_vm13, %v1860_v9, -inf }
 0xf3d   :  { %1874 = vmax.xlane.f32.xlu0 %v1873_v13  ;;  %1877 = vmax.xlane.f32.xlu1 %v1876_v15  ;;  %v1863_v23 = vadd.f32 %v3852_v22, %v1855_v14 }
 0xf3e   :  { %v1862_v58 = vadd.f32 %v3851_v18, %v1854_v16 }
 0xf3f   :  { %v1885_v24 = vsel %vm722_vm13, %v1863_v23, -inf }
 0xf40   :  { %v1882_v20 = vsel %vm722_vm13, %v1862_v58, -inf }
 0xf41   :  { %1880 = vmax.xlane.f32.xlu0 %v1879_v55  ;;  %1883 = vmax.xlane.f32.xlu1 %v1882_v20 }
 0xf45   :  { %1886 = vmax.xlane.f32.xlu0 %v1885_v24 }
 0xf52   :  { %3706 = vrot.lane.b32.xlu1 %v4345_v57, %s3881_s23 }
 0xfc1   :  { %v1869_v1 = vpop.xlane.xlu1 %1868 }
 0xfc2   :  { %v1889_v25 = vsub.f32 %v1857_v42, %v1869_v1  ;;  %v1866_v63 = vpop.xlane.xlu0 %1865 }
 0xfc3   :  { %v1888_v28 = vsub.f32 %v1856_v45, %v1866_v63 }
 0xfc4   :  { %v1898_v0 = vmul.f32 1.442695, %v1889_v25 }
 0xfc5   :  { %v1896_v29 = vmul.f32 1.442695, %v1888_v28 }
 0xfc6   :  { %3789 = vpow2.f32 %v1898_v0  ;;  %v1872_v30 = vpop.xlane.xlu0 %1871 }
 0xfc7   :  { %3791 = vpow2.f32 %v1896_v29  ;;  %v1890_v5 = vsub.f32 %v1858_v56, %v1872_v30  ;;  %v2919_v30 = vld [vmem:[%s4613_s6 + $0x20] sm:$0xff] }
 0xfc9   :  { %v1900_v31 = vmul.f32 1.442695, %v1890_v5  ;;  %v2920_v5 = vld [vmem:[%s4613_s6 + $0x28] sm:$0xff] }
 0xfca   :  { %v1875_v32 = vpop.xlane.xlu0 %1874  ;;  %v1878_v34 = vpop.xlane.xlu1 %1877 }
 0xfcb   :  { %3793 = vpow2.f32 %v1900_v31  ;;  %v1891_v35 = vsub.f32 %v1859_v62, %v1875_v32  ;;  %v1892_v36 = vsub.f32 %v1860_v9, %v1878_v34  ;;  %v3584_v32 = vpack.c.bf16 %v2920_v5, %v2919_v30 }
 0xfcd   :  { %v1902_v33 = vmul.f32 1.442695, %v1891_v35  ;;  %v1904_v37 = vmul.f32 1.442695, %v1892_v36 }
 0xfce   :  { %v1881_v38 = vpop.xlane.xlu0 %1880  ;;  %v1884_v57 = vpop.xlane.xlu1 %1883 }
 0xfcf   :  { %3795 = vpow2.f32 %v1902_v33  ;;  %v1893_v39 = vsub.f32 %v1861_v17, %v1881_v38  ;;  %v1894_v42 = vsub.f32 %v1862_v58, %v1884_v57 }
 0xfd0   :  { %v4420_v40 = vpop.eup %3789  ;;  %3797 = vpow2.f32 %v1904_v37 }
 0xfd1   :  { %v3792_v41 = vpop.eup %3791  ;;  %v1906_v12 = vmul.f32 1.442695, %v1893_v39  ;;  %v1915_v43 = vsel %vm722_vm13, %v4420_v40, 0.0  ;;  %v1908_v53 = vmul.f32 1.442695, %v1894_v42 }
 0xfd2   :  { %1916 = vadd.xlane.f32.xlu0 %v1915_v43  ;;  %v1887_v44 = vpop.xlane.xlu0 %1886  ;;  %v3707_v45 = vpop.permute.xlu1 %3706  ;;  %v1912_v46 = vsel %vm722_vm13, %v3792_v41, 0.0 }
 0xfd3   :  { %3799 = vpow2.f32 %v1906_v12  ;;  %v1895_v47 = vsub.f32 %v1863_v23, %v1887_v44  ;;  %v3709_v48 = vunpack.i.h.bf16 %v3707_v45  ;;  %v3708_v49 = vunpack.i.l.bf16 %v3707_v45  ;;  %1913 = vadd.xlane.f32.xlu1 %v1912_v46  ;;  %v2926_v45 = vld [vmem:[%s4613_s6 + $0x30] sm:$0xff]  ;;  %v2927_v46 = vld [vmem:[%s4613_s6 + $0x38] sm:$0xff] }
 0xfd5   :  { %v4425_v51 = vpop.eup %3793  ;;  %v1910_v54 = vmul.f32 1.442695, %v1895_v47  ;;  %v3568_v56 = vpack.c.bf16 %v3709_v48, %v3708_v49  ;;  %v3588_v47 = vpack.c.bf16 %v2927_v46, %v2926_v45 }
 0xfd6   :  { %v1918_v59 = vsel %vm722_vm13, %v4425_v51, 0.0 }
 0xfd7   :  { %3801 = vpow2.f32 %v1910_v54  ;;  %1919 = vadd.xlane.f32.xlu1 %v1918_v59  ;;  %3569 = vmatprep.subr.bf16.mxu0 %v3568_v56 }
 0xfd8   :  { %3571 = vmatpush3.bf16.msra.mxu0 %v3568_v56  ;;  %3803 = vpow2.f32 %v1908_v53 }
 0xfd9   :  { %v4429_v61 = vpop.eup %3795 }
 0xfda   :  { %v4431_v62 = vpop.eup %3797  ;;  %v1921_v2 = vsel %vm722_vm13, %v4429_v61, 0.0 }
 0xfdb   :  { %1922 = vadd.xlane.f32.xlu0 %v1921_v2  ;;  %v1924_v3 = vsel %vm722_vm13, %v4431_v62, 0.0 }
 0xfdc   :  { %1925 = vadd.xlane.f32.xlu1 %v1924_v3 }
 0xfdd   :  { %v4437_v4 = vpop.eup %3799 }
 0xfde   :  { %v1927_v7 = vsel %vm722_vm13, %v4437_v4, 0.0 }
 0xfdf   :  { %1928 = vadd.xlane.f32.xlu0 %v1927_v7 }
 0xfe1   :  { %v4441_v50 = vpop.eup %3801 }
 0xfe2   :  { %v1933_v9 = vsel %vm722_vm13, %v4441_v50, 0.0  ;;  %v4445_v8 = vpop.eup %3803 }
 0xfe3   :  { %1934 = vadd.xlane.f32.xlu0 %v1933_v9  ;;  %v1930_v13 = vsel %vm722_vm13, %v4445_v8, 0.0 }
 0xfe7   :  { %1931 = vadd.xlane.f32.xlu0 %v1930_v13 }
 0xfed   :  { %3716 = vrot.lane.b32.xlu1 %v4355_v21, %s3881_s23 }
 0xff1   :  { %3721 = vrot.lane.b32.xlu1 %v4361_v27, %s3881_s23 }
 0xffd   :  { %3711 = vrot.lane.b32.xlu0 %v4351_v19, %s3881_s23 }
0x105f   :  { %v1917_v16 = vpop.xlane.xlu0 %1916 }
0x1060   :  { %v1914_v14 = vpop.xlane.xlu1 %1913 }
0x1061   :  { %3805 = vrcp.f32 %v1914_v14 }
0x1062   :  { %3807 = vrcp.f32 %v1917_v16 }
0x1064   :  { %v1920_v15 = vpop.xlane.xlu1 %1919 }
0x1065   :  { %3809 = vrcp.f32 %v1920_v15 }
0x1068   :  { %v1923_v60 = vpop.xlane.xlu0 %1922 }
0x1069   :  { %v1926_v55 = vpop.xlane.xlu1 %1925  ;;  %3811 = vrcp.f32 %v1923_v60 }
0x106a   :  { %3813 = vrcp.f32 %v1926_v55 }
0x106b   :  { %v3806_v17 = vpop.eup %3805 }
0x106c   :  { %v1929_v18 = vpop.xlane.xlu0 %1928  ;;  %v1944_v58 = vmul.f32 %v3806_v17, %v3792_v41  ;;  %v3808_v34 = vpop.eup %3807 }
0x106d   :  { %v3717_v22 = vpop.permute.xlu1 %3716  ;;  %3815 = vrcp.f32 %v1929_v18  ;;  %v1945_v36 = vmul.f32 %v3808_v34, %v4420_v40  ;;  %v2935_v34 = vld [vmem:[%s4614_s7 + $0x28] sm:$0xff] }
0x106e   :  { %3355 = vmatprep.mubr.msk.f32.mxu0 %vm722_vm13, %v1944_v58  ;;  %v3719_v24 = vunpack.i.h.bf16 %v3717_v22  ;;  %v3718_v27 = vunpack.i.l.bf16 %v3717_v22 }
0x106f   :  { %v3810_v35 = vpop.eup %3809 }
0x1070   :  { %v1935_v20 = vpop.xlane.xlu0 %1934  ;;  %v3576_v28 = vpack.c.bf16 %v3719_v24, %v3718_v27  ;;  %v1946_v37 = vmul.f32 %v3810_v35, %v4425_v51 }
0x1071   :  { %v3722_v19 = vpop.permute.xlu1 %3721 }
0x1072   :  { %v3724_v0 = vunpack.i.h.bf16 %v3722_v19  ;;  %v3723_v29 = vunpack.i.l.bf16 %v3722_v19 }
0x1073   :  { %v3812_v33 = vpop.eup %3811 }
0x1074   :  { %v1932_v21 = vpop.xlane.xlu0 %1931  ;;  %v3580_v31 = vpack.c.bf16 %v3724_v0, %v3723_v29  ;;  %v3814_v38 = vpop.eup %3813  ;;  %v1947_v57 = vmul.f32 %v3812_v33, %v4429_v61  ;;  %v2937_v33 = vld [vmem:[%s4614_s7 + $0x38] sm:$0xff] }
0x1075   :  { %3817 = vrcp.f32 %v1932_v21  ;;  %v1948_v41 = vmul.f32 %v3814_v38, %v4431_v62  ;;  %v2925_v62 = vld [vmem:[%s4617_s10 + $0x8] ss:$0 sm:$0xff] }
0x1076   :  { %3819 = vrcp.f32 %v1935_v20 }
0x1077   :  { %v3816_v39 = vpop.eup %3815 }
0x1078   :  { %v3712_v23 = vpop.permute.xlu0 %3711  ;;  %v1949_v40 = vmul.f32 %v3816_v39, %v4437_v4 }
0x1079   :  { %v3714_v1 = vunpack.i.h.bf16 %v3712_v23  ;;  %v3713_v25 = vunpack.i.l.bf16 %v3712_v23 }
0x107b   :  { %v3572_v63 = vpack.c.bf16 %v3714_v1, %v3713_v25 }
0x107d   :  { %3573 = vmatprep.subr.bf16.mxu0 %v3572_v63 }
0x107e   :  { %3575 = vmatpush3.bf16.msra.mxu0 %v3572_v63 }
0x107f   :  { %3577 = vmatprep.subr.bf16.mxu0 %v3576_v28  ;;  %v3818_v12 = vpop.eup %3817 }
0x1080   :  { %v3820_v42 = vpop.eup %3819  ;;  %v1950_v43 = vmul.f32 %v3818_v12, %v4445_v8 }
0x1081   :  { %v1951_v44 = vmul.f32 %v3820_v42, %v4441_v50 }
0x1082   :  { %3579 = vmatpush3.bf16.msra.mxu0 %v3576_v28 }
0x1083   :  { %3581 = vmatprep.subr.bf16.mxu0 %v3580_v31 }
0x1086   :  { %3583 = vmatpush3.bf16.msra.mxu0 %v3580_v31 }
0x1087   :  { %3585 = vmatprep.subr.bf16.mxu0 %v3584_v32 }
0x1089   :  { %3356 = vmatmul.mubr.msk.f32.vlgmr.msra.gmra.mrb[20].mxu0 %vm722_vm13, %v1945_v36  ;;  %v2936_v36 = vld [vmem:[%s4614_s7 + $0x30] sm:$0xff] }
0x108a   :  { %3358 = vmatprep.mubr.msk.f32.mxu0 %vm722_vm13, %v1946_v37  ;;  %3587 = vmatpush3.bf16.msra.mxu0 %v3584_v32  ;;  %v2934_v32 = vld [vmem:[%s4614_s7 + $0x20] sm:$0xff]  ;;  %v3596_v37 = vpack.c.bf16 %v2937_v33, %v2936_v36 }
0x108b   :  { %3589 = vmatprep.subr.bf16.mxu0 %v3588_v47  ;;  %v3592_v35 = vpack.c.bf16 %v2935_v34, %v2934_v32 }
0x108d   :  { %3359 = vmatmul.mubr.msk.f32.gmra.mrb[22].mxu0 %vm722_vm13, %v1947_v57  ;;  %3593 = vmatprep.subr.bf16.mxu1 %v3592_v35 }
0x108e   :  { %3361 = vmatprep.mubr.msk.f32.mxu0 %vm722_vm13, %v1948_v41  ;;  %3595 = vmatpush3.bf16.msra.mxu1 %v3592_v35 }
0x108f   :  { %3597 = vmatprep.subr.bf16.mxu1 %v3596_v37 }
0x1091   :  { %3362 = vmatmul.mubr.msk.f32.gmra.mrb[24].mxu0 %vm722_vm13, %v1949_v40 }
0x1092   :  { %3364 = vmatprep.mubr.msk.f32.mxu0 %vm722_vm13, %v1950_v43  ;;  %3599 = vmatpush3.bf16.msra.mxu1 %v3596_v37 }
0x1093   :  { %3423 = vmatprep.subr.mxu1 %v3878_v26 }
0x1095   :  { %3365 = vmatmul.mubr.msk.f32.gmra.mrb[26].mxu0 %vm722_vm13, %v1951_v44 }
0x115c   :  { %v3357_v48 = vpop.f32.mrb[20].mxu0 }
0x115d   :  { %v2066_v49 = vpop.f32.mrb[21].mxu0 }
0x115e   :  { %3371 = vmatprep.mubr.msk.f32.mxu0 %vm149_vm0, %v2066_v49  ;;  %v2932_v49 = vld [vmem:[%s4617_s10 + $0x9] ss:$0 sm:$0xff] }
0x115f   :  { %3372 = vmatmul.mubr.msk.f32.vlgmr.msra.gmra.mrb[28].mxu0 %vm149_vm0, %v3357_v48 }
0x1160   :  { %v3360_v51 = vpop.f32.mrb[22].mxu0  ;;  %3591 = vmatpush3.bf16.msra.mxu0 %v3588_v47 }
0x1161   :  { %v2076_v53 = vpop.f32.mrb[23].mxu0 }
0x1162   :  { %3374 = vmatprep.mubr.msk.f32.mxu0 %vm149_vm0, %v2076_v53 }
0x1163   :  { %3375 = vmatmul.mubr.msk.f32.gmra.mrb[30].mxu0 %vm149_vm0, %v3360_v51 }
0x1164   :  { %v3363_v54 = vpop.f32.mrb[24].mxu0 }
0x1165   :  { %v2086_v56 = vpop.f32.mrb[25].mxu0 }
0x1166   :  { %3381 = vmatprep.mubr.msk.f32.mxu0 %vm149_vm0, %v2086_v56  ;;  %v2933_v56 = vld [vmem:[%s4617_s10 + $0xa] ss:$0 sm:$0xff] }
0x1167   :  { %3382 = vmatmul.mubr.msk.f32.vlgmr.msra.gmra.mrb[28].mxu0 %vm149_vm0, %v3363_v54 }
0x1168   :  { %v3366_v59 = vpop.f32.mrb[26].mxu0 }
0x1169   :  { %v2096_v61 = vpop.f32.mrb[27].mxu0 }
0x116a   :  { %3384 = vmatprep.mubr.msk.f32.mxu0 %vm149_vm0, %v2096_v61 }
0x116b   :  { %3385 = vmatmul.mubr.msk.f32.gmra.mrb[30].mxu0 %vm149_vm0, %v3366_v59  ;;  %vm2797_vm0 = vcmask 9216  }
0x123a   :  { %v3383_v2 = vpop.f32.mrb[28].mxu0 }
0x123b   :  { %v3624_v3 = vadd.f32 %v3383_v2, %v2925_v62  ;;  %v2294_v4 = vpop.f32.mrb[29].mxu0 }
0x123c   :  { %v3625_v7 = vadd.f32 %v2925_v62, %v2294_v4 }
0x123d   :  { %v2318_v50 = vadd.f32 %v3624_v3, %v4325_v52 }
0x123e   :  { %v3386_v9 = vpop.f32.mrb[30].mxu0  ;;  %v2317_v8 = vadd.f32 %v3625_v7, %v4323_v6 }
0x123f   :  { %v3626_v13 = vadd.f32 %v3386_v9, %v2925_v62  ;;  %v2304_v14 = vpop.f32.mrb[31].mxu0  ;;  %v2324_v16 = vsel %vm351_vm11, %v2318_v50, 0.0 }
0x1240   :  { %v3627_v15 = vadd.f32 %v2925_v62, %v2304_v14  ;;  %2325 = vadd.xlane.f32.xlu0 %v2324_v16  ;;  %v2321_v60 = vsel %vm351_vm11, %v2317_v8, 0.0  ;;  %v2943_v16 = vld [vmem:[%s4616_s9 + $0x40] sm:$0xff] }
0x1241   :  { %2322 = vadd.xlane.f32.xlu1 %v2321_v60  ;;  %v2320_v17 = vadd.f32 %v3626_v13, %v4333_v11 }
0x1242   :  { %v2319_v18 = vadd.f32 %v3627_v15, %v4331_v10  ;;  %v2944_v15 = vld [vmem:[%s4616_s9 + $0x48] sm:$0xff] }
0x1243   :  { %v2330_v58 = vsel %vm351_vm11, %v2320_v17, 0.0  ;;  %v3600_v60 = vpack.c.bf16 %v2944_v15, %v2943_v16  ;;  %v2951_v16 = vld [vmem:[%s4617_s10 + $0xb] ss:$0 sm:$0xff] }
0x1244   :  { %2331 = vadd.xlane.f32.xlu0 %v2330_v58  ;;  %v2327_v52 = vsel %vm351_vm11, %v2319_v18, 0.0 }
0x1245   :  { %2328 = vadd.xlane.f32.xlu1 %v2327_v52  ;;  %3601 = vmatprep.subr.bf16.mxu0 %v3600_v60  ;;  %v2947_v52 = vld [vmem:[%s4616_s9 + $0x60] sm:$0xff] }
0x1246   :  { %3603 = vmatpush3.bf16.msra.mxu0 %v3600_v60 }
0x12cd   :  { %v2326_v6 = vpop.xlane.xlu0 %2325 }
0x12ce   :  { %v2334_v55 = vmul.f32 0.03125, %v2326_v6  ;;  %v2323_v20 = vpop.xlane.xlu1 %2322  ;;  %v2948_v6 = vld [vmem:[%s4616_s9 + $0x68] sm:$0xff] }
0x12cf   :  { %v2333_v22 = vmul.f32 0.03125, %v2323_v20  ;;  %v2949_v20 = vld [vmem:[%s4616_s9 + $0x70] sm:$0xff] }
0x12d0   :  { %v2338_v21 = vsub.f32 %v2318_v50, %v2334_v55  ;;  %v3608_v55 = vpack.c.bf16 %v2948_v6, %v2947_v52 }
0x12d1   :  { %v2337_v23 = vsub.f32 %v2317_v8, %v2333_v22  ;;  %v2332_v24 = vpop.xlane.xlu0 %2331  ;;  %v2950_v22 = vld [vmem:[%s4616_s9 + $0x78] sm:$0xff] }
0x12d2   :  { %v2336_v27 = vmul.f32 0.03125, %v2332_v24  ;;  %v2329_v1 = vpop.xlane.xlu1 %2328  ;;  %v2342_v25 = vmul.f32 %v2338_v21, %v2338_v21 }
0x12d3   :  { %v2335_v19 = vmul.f32 0.03125, %v2329_v1  ;;  %v2341_v11 = vmul.f32 %v2337_v23, %v2337_v23 }
0x12d4   :  { %v2340_v63 = vsub.f32 %v2320_v17, %v2336_v27  ;;  %v2348_v10 = vsel %vm351_vm11, %v2342_v25, 0.0  ;;  %v2945_v17 = vld [vmem:[%s4616_s9 + $0x50] sm:$0xff] }
0x12d5   :  { %v2339_v28 = vsub.f32 %v2319_v18, %v2335_v19  ;;  %2349 = vadd.xlane.f32.xlu0 %v2348_v10  ;;  %v2345_v0 = vsel %vm351_vm11, %v2341_v11, 0.0  ;;  %v2946_v18 = vld [vmem:[%s4616_s9 + $0x58] sm:$0xff] }
0x12d6   :  { %2346 = vadd.xlane.f32.xlu1 %v2345_v0  ;;  %v2344_v29 = vmul.f32 %v2340_v63, %v2340_v63  ;;  %v3604_v58 = vpack.c.bf16 %v2946_v18, %v2945_v17 }
0x12d7   :  { %v2343_v30 = vmul.f32 %v2339_v28, %v2339_v28 }
0x12d8   :  { %v2354_v5 = vsel %vm351_vm11, %v2344_v29, 0.0  ;;  %3605 = vmatprep.subr.bf16.mxu0 %v3604_v58 }
0x12d9   :  { %2355 = vadd.xlane.f32.xlu0 %v2354_v5  ;;  %v2351_v31 = vsel %vm351_vm11, %v2343_v30, 0.0  ;;  %3607 = vmatpush3.bf16.msra.mxu0 %v3604_v58 }
0x12da   :  { %2352 = vadd.xlane.f32.xlu1 %v2351_v31  ;;  %3609 = vmatprep.subr.bf16.mxu0 %v3608_v55 }
0x12dd   :  { %3611 = vmatpush3.bf16.msra.mxu0 %v3608_v55 }
0x1362   :  { %v2350_v38 = vpop.xlane.xlu0 %2349 }
0x1363   :  { %v2358_v57 = vmul.f32 0.03125, %v2350_v38  ;;  %v2347_v39 = vpop.xlane.xlu1 %2346 }
0x1364   :  { %v2357_v41 = vmul.f32 0.03125, %v2347_v39 }
0x1365   :  { %v2362_v12 = vadd.f32 1e-12, %v2358_v57 }
0x1366   :  { %v2361_v40 = vadd.f32 1e-12, %v2357_v41  ;;  %v2356_v42 = vpop.xlane.xlu0 %2355 }
0x1367   :  { %3821 = vrsqrt.f32 %v2362_v12  ;;  %v2360_v43 = vmul.f32 0.03125, %v2356_v42  ;;  %v2353_v44 = vpop.xlane.xlu1 %2352 }
0x1368   :  { %3823 = vrsqrt.f32 %v2361_v40  ;;  %v2359_v45 = vmul.f32 0.03125, %v2353_v44 }
0x1369   :  { %v2364_v46 = vadd.f32 1e-12, %v2360_v43 }
0x136a   :  { %v2363_v47 = vadd.f32 1e-12, %v2359_v45 }
0x136b   :  { %3825 = vrsqrt.f32 %v2364_v46 }
0x136c   :  { %3827 = vrsqrt.f32 %v2363_v47 }
0x1371   :  { %v3822_v48 = vpop.eup %3821 }
0x1372   :  { %v3824_v51 = vpop.eup %3823  ;;  %v2370_v53 = vmul.f32 %v3822_v48, %v2338_v21  ;;  %v3612_v21 = vpack.c.bf16 %v2950_v22, %v2949_v20 }
0x1373   :  { %v2369_v54 = vmul.f32 %v3824_v51, %v2337_v23  ;;  %v2938_v23 = vld [vmem:[%s4615_s8 + $0x1] ss:$0 sm:$0xff] }
0x1374   :  { %v2378_v59 = vmul.f32 %v2932_v49, %v2370_v53  ;;  %3613 = vmatprep.subr.bf16.mxu0 %v3612_v21 }
0x1375   :  { %v3826_v61 = vpop.eup %3825  ;;  %v2377_v62 = vmul.f32 %v2932_v49, %v2369_v54  ;;  %3615 = vmatpush3.bf16.msra.mxu0 %v3612_v21 }
0x1376   :  { %v3828_v2 = vpop.eup %3827  ;;  %v2372_v3 = vmul.f32 %v3826_v61, %v2340_v63  ;;  %v4526_v50 = vadd.f32 %v2933_v56, %v2378_v59 }
0x1377   :  { %v4524_v4 = vadd.f32 %v2933_v56, %v2377_v62  ;;  %v2371_v7 = vmul.f32 %v3828_v2, %v2339_v28 }
0x1378   :  { %v2380_v9 = vmul.f32 %v2932_v49, %v2372_v3 }
0x1379   :  { %3395 = vmatprep.mubr.msk.f32.mxu1 %vm351_vm11, %v4524_v4  ;;  %v2379_v8 = vmul.f32 %v2932_v49, %v2371_v7 }
0x137a   :  { %3396 = vmatmul.mubr.msk.f32.vlgmr.msra.gmra.mrb[32].mxu1 %vm351_vm11, %v4526_v50  ;;  %v4534_v14 = vadd.f32 %v2933_v56, %v2380_v9 }
0x137b   :  { %v4532_v13 = vadd.f32 %v2933_v56, %v2379_v8 }
0x137d   :  { %3398 = vmatprep.mubr.msk.f32.mxu1 %vm351_vm11, %v4532_v13 }
0x137e   :  { %3399 = vmatmul.mubr.msk.f32.gmra.mrb[34].mxu1 %vm351_vm11, %v4534_v14 }
0x137f   :  { %3425 = vmatprep.mubr.msk.f32.mxu1 %vm3882_vm14, %v3878_v26  ;;  %v2956_v26 = vld [vmem:[%s4617_s10 + $0xc] ss:$0 sm:$0xff] }
0x144d   :  { %v3397_v24 = vpop.f32.mrb[32].mxu1 }
0x144e   :  { %v2483_v27 = vadd.f32 %v3397_v24, %v2938_v23  ;;  %v2477_v1 = vpop.f32.mrb[33].mxu1 }
0x144f   :  { %v2478_v25 = vadd.f32 %v2938_v23, %v2477_v1 }
0x1450   :  { %v2501_v19 = vmul.f32 0.044715, %v2483_v27  ;;  %v2497_v49 = vmul.f32 0.5, %v2483_v27 }
0x1451   :  { %v2500_v11 = vmul.f32 0.044715, %v2478_v25  ;;  %v3400_v63 = vpop.f32.mrb[34].mxu1  ;;  %v2496_v47 = vmul.f32 0.5, %v2478_v25 }
0x1452   :  { %v2505_v10 = vmul.f32 %v2501_v19, %v2483_v27  ;;  %v2493_v28 = vadd.f32 %v3400_v63, %v2938_v23  ;;  %v2487_v0 = vpop.f32.mrb[35].mxu1 }
0x1453   :  { %v2504_v29 = vmul.f32 %v2500_v11, %v2478_v25  ;;  %v2488_v30 = vadd.f32 %v2938_v23, %v2487_v0 }
0x1454   :  { %v2509_v5 = vmul.f32 %v2505_v10, %v2483_v27  ;;  %v2503_v31 = vmul.f32 0.044715, %v2493_v28  ;;  %v2499_v2 = vmul.f32 0.5, %v2493_v28 }
0x1455   :  { %v2508_v32 = vmul.f32 %v2504_v29, %v2478_v25  ;;  %v2502_v34 = vmul.f32 0.044715, %v2488_v30  ;;  %v2498_v61 = vmul.f32 0.5, %v2488_v30 }
0x1456   :  { %v2513_v35 = vadd.f32 %v2509_v5, %v2483_v27  ;;  %v2507_v36 = vmul.f32 %v2503_v31, %v2493_v28 }
0x1457   :  { %v2512_v33 = vadd.f32 %v2508_v32, %v2478_v25  ;;  %v2506_v37 = vmul.f32 %v2502_v34, %v2488_v30 }
0x1458   :  { %v2517_v38 = vmul.f32 0.7978846, %v2513_v35  ;;  %v2511_v57 = vmul.f32 %v2507_v36, %v2493_v28 }
0x1459   :  { %v2510_v39 = vmul.f32 %v2506_v37, %v2488_v30  ;;  %v2516_v41 = vmul.f32 0.7978846, %v2512_v33 }
0x145a   :  { %3829 = vtanh.f32 %v2517_v38  ;;  %v2515_v12 = vadd.f32 %v2511_v57, %v2493_v28 }
0x145b   :  { %v2514_v40 = vadd.f32 %v2510_v39, %v2488_v30  ;;  %3831 = vtanh.f32 %v2516_v41 }
0x145c   :  { %v2519_v42 = vmul.f32 0.7978846, %v2515_v12 }
0x145d   :  { %v2518_v43 = vmul.f32 0.7978846, %v2514_v40 }
0x145e   :  { %3833 = vtanh.f32 %v2519_v42 }
0x145f   :  { %3835 = vtanh.f32 %v2518_v43 }
0x1464   :  { %v3830_v44 = vpop.eup %3829 }
0x1465   :  { %v3832_v45 = vpop.eup %3831  ;;  %v2525_v46 = vadd.f32 1.0, %v3830_v44 }
0x1466   :  { %v2524_v48 = vadd.f32 1.0, %v3832_v45 }
0x1467   :  { %v2529_v56 = vmul.f32 %v2525_v46, %v2497_v49 }
0x1468   :  { %v3834_v51 = vpop.eup %3833  ;;  %v2528_v53 = vmul.f32 %v2524_v48, %v2496_v47 }
0x1469   :  { %v3836_v54 = vpop.eup %3835  ;;  %v2527_v59 = vadd.f32 1.0, %v3834_v51  ;;  %v2957_v51 = vld [vmem:[%s4617_s10 + $0xd] ss:$0 sm:$0xff]  ;;  %s3883_s10 = smov [#allocation2]  }
0x146a   :  { %3417 = vmatprep.mubr.msk.f32.mxu0 %vm722_vm13, %v2528_v53  ;;  %v2526_v62 = vadd.f32 1.0, %v3836_v54  ;;  %s2805_s25 = sshll.u32 %s3883_s10, 4  ;;  %s2806_s25 = int_to_ptr.vmem [resolvable:$true] %s2805_s25 }
0x146b   :  { %3418 = vmatmul.mubr.msk.f32.vlgmr.msra.gmra.mrb[32].mxu0 %vm722_vm13, %v2529_v56  ;;  %v2531_v7 = vmul.f32 %v2527_v59, %v2499_v2  ;;  %s3853_s7 = scalar_lea.vmem %s2806_s25, 32  ;;  %p3858_p1 = scmp.lt.s32.totalorder %s2806_s25, %s2806_s25 }
0x146c   :  { %v2530_v3 = vmul.f32 %v2526_v62, %v2498_v61  ;;  %p3854_p0 = scmp.ne.s32.totalorder %s2806_s25, %s3853_s7  ;;  %p3859_p2 = scmp.lt.s32.totalorder %s3853_s7, %s3853_s7 }
0x146e   :  { %3420 = vmatprep.mubr.msk.f32.mxu0 %vm722_vm13, %v2530_v3  ;;  %p3860_p3 = por %p3859_p2, %p3858_p1 }
0x146f   :  { %3421 = vmatmul.mubr.msk.f32.gmra.mrb[34].mxu0 %vm722_vm13, %v2531_v7 }
0x1470   :  { %p3861_p4 = pnand %p3860_p3, %p3854_p0 }
0x153e   :  { %v3419_v9 = vpop.f32.mrb[32].mxu0 }
0x153f   :  { %v2623_v8 = vpop.f32.mrb[33].mxu0  ;;  %v2629_v60 = vadd.f32 %v3419_v9, %v2951_v16 }
0x1540   :  { %v2624_v58 = vadd.f32 %v2951_v16, %v2623_v8 }
0x1541   :  { %v2643_v22 = vadd.f32 %v2629_v60, %v4526_v50 }
0x1542   :  { %v3422_v15 = vpop.f32.mrb[34].mxu0  ;;  %v2642_v23 = vadd.f32 %v2624_v58, %v4524_v4 }
0x1543   :  { %v2639_v17 = vadd.f32 %v3422_v15, %v2951_v16  ;;  %v2633_v18 = vpop.f32.mrb[35].mxu0  ;;  %v2649_v24 = vsel %vm351_vm11, %v2643_v22, 0.0 }
0x1544   :  { %v2634_v52 = vadd.f32 %v2951_v16, %v2633_v18  ;;  %v2646_v27 = vsel %vm351_vm11, %v2642_v23, 0.0 }
0x1545   :  { %v2645_v6 = vadd.f32 %v2639_v17, %v4534_v14 }
0x1546   :  { %v2644_v55 = vadd.f32 %v2634_v52, %v4532_v13 }
0x1547   :  { %v2655_v20 = vsel %vm351_vm11, %v2645_v6, 0.0 }
0x1548   :  { %2656 = vadd.xlane.f32.xlu1 %v2655_v20  ;;  %v2652_v21 = vsel %vm351_vm11, %v2644_v55, 0.0 }
0x1549   :  { %2653 = vadd.xlane.f32.xlu0 %v2652_v21 }
0x154c   :  { %2650 = vadd.xlane.f32.xlu1 %v2649_v24 }
0x154d   :  { %2647 = vadd.xlane.f32.xlu0 %v2646_v27 }
0x15d5   :  { %v2657_v1 = vpop.xlane.xlu1 %2656 }
0x15d6   :  { %v2661_v14 = vmul.f32 0.03125, %v2657_v1  ;;  %v2654_v25 = vpop.xlane.xlu0 %2653 }
0x15d7   :  { %v2660_v13 = vmul.f32 0.03125, %v2654_v25 }
0x15d8   :  { %v2665_v19 = vsub.f32 %v2645_v6, %v2661_v14 }
0x15d9   :  { %v2664_v11 = vsub.f32 %v2644_v55, %v2660_v13  ;;  %v2651_v63 = vpop.xlane.xlu1 %2650 }
0x15da   :  { %v2659_v50 = vmul.f32 0.03125, %v2651_v63  ;;  %v2648_v10 = vpop.xlane.xlu0 %2647  ;;  %v2669_v28 = vmul.f32 %v2665_v19, %v2665_v19 }
0x15db   :  { %v2658_v0 = vmul.f32 0.03125, %v2648_v10  ;;  %v2668_v29 = vmul.f32 %v2664_v11, %v2664_v11 }
0x15dc   :  { %v2663_v4 = vsub.f32 %v2643_v22, %v2659_v50  ;;  %v2679_v30 = vsel %vm351_vm11, %v2669_v28, 0.0 }
0x15dd   :  { %v2662_v5 = vsub.f32 %v2642_v23, %v2658_v0  ;;  %2680 = vadd.xlane.f32.xlu1 %v2679_v30  ;;  %v2676_v31 = vsel %vm351_vm11, %v2668_v29, 0.0 }
0x15de   :  { %2677 = vadd.xlane.f32.xlu0 %v2676_v31  ;;  %v2667_v32 = vmul.f32 %v2663_v4, %v2663_v4 }
0x15df   :  { %v2666_v34 = vmul.f32 %v2662_v5, %v2662_v5 }
0x15e0   :  { %v2673_v35 = vsel %vm351_vm11, %v2667_v32, 0.0 }
0x15e1   :  { %2674 = vadd.xlane.f32.xlu1 %v2673_v35  ;;  %v2670_v36 = vsel %vm351_vm11, %v2666_v34, 0.0 }
0x15e2   :  { %2671 = vadd.xlane.f32.xlu0 %v2670_v36 }
0x166a   :  { %v2681_v33 = vpop.xlane.xlu1 %2680 }
0x166b   :  { %v2685_v37 = vmul.f32 0.03125, %v2681_v33  ;;  %v2678_v38 = vpop.xlane.xlu0 %2677 }
0x166c   :  { %v2684_v57 = vmul.f32 0.03125, %v2678_v38 }
0x166d   :  { %v2689_v39 = vadd.f32 1e-12, %v2685_v37 }
0x166e   :  { %v2688_v41 = vadd.f32 1e-12, %v2684_v57  ;;  %v2675_v12 = vpop.xlane.xlu1 %2674 }
0x166f   :  { %3837 = vrsqrt.f32 %v2689_v39  ;;  %v2683_v40 = vmul.f32 0.03125, %v2675_v12  ;;  %v2672_v42 = vpop.xlane.xlu0 %2671 }
0x1670   :  { %3839 = vrsqrt.f32 %v2688_v41  ;;  %v2682_v43 = vmul.f32 0.03125, %v2672_v42 }
0x1671   :  { %v2687_v44 = vadd.f32 1e-12, %v2683_v40 }
0x1672   :  { %v2686_v45 = vadd.f32 1e-12, %v2682_v43 }
0x1673   :  { %3841 = vrsqrt.f32 %v2687_v44 }
0x1674   :  { %3843 = vrsqrt.f32 %v2686_v45 }
0x1679   :  { %v3838_v46 = vpop.eup %3837 }
0x167a   :  { %v3840_v47 = vpop.eup %3839  ;;  %v2697_v48 = vmul.f32 %v3838_v46, %v2665_v19 }
0x167b   :  { %v2696_v49 = vmul.f32 %v3840_v47, %v2664_v11 }
0x167c   :  { %v2705_v53 = vmul.f32 %v2956_v26, %v2697_v48 }
0x167d   :  { %v3842_v54 = vpop.eup %3841  ;;  %v2704_v56 = vmul.f32 %v2956_v26, %v2696_v49 }
0x167e   :  { %v3844_v59 = vpop.eup %3843  ;;  %v2695_v61 = vmul.f32 %v3842_v54, %v2663_v4  ;;  %v2713_v62 = vadd.f32 %v2957_v51, %v2705_v53 }
0x167f   :  { %v2694_v2 = vmul.f32 %v3844_v59, %v2662_v5  ;;  %v2712_v3 = vadd.f32 %v2957_v51, %v2704_v56 }
0x1680   :  { %v2703_v7 = vmul.f32 %v2956_v26, %v2695_v61  ;;  %v2721_v9 = vrot.slane %v2713_v62, 7 }
0x1681   :  { %v2702_v8 = vmul.f32 %v2956_v26, %v2694_v2 }
0x1682   :  { %v2722_v16 = vsel %vm2717_vm15, %v2721_v9, %v2712_v3  ;;  %v2711_v15 = vadd.f32 %v2957_v51, %v2703_v7 }
0x1683   :  { %3424 = vmatpush3.xpose.msk.msra.mxu1 %vm351_vm11, %v2722_v16  ;;  %v2710_v60 = vadd.f32 %v2957_v51, %v2702_v8 }
0x1684   :  { %v2716_v17 = vrot.slane %v2711_v15, 7 }
0x1686   :  { %v2718_v18 = vsel %vm2717_vm15, %v2716_v17, %v2710_v60 }
0x1687   :  { %3426 = vmatmul.mubr.msk.f32.vlgmr.msra.gmra.mrb[36].mxu1 %vm351_vm11, %v2718_v18 }
0x175a   :  { %v2793_v58 = vpop.f32.mrb[36].mxu1 }
0x175b   :  { %2798 = vst.msk [vmem:[#allocation2] sm:$0x3] %vm2797_vm0, %v2793_v58  ;;  %v3427_v52 = vpop.f32.mrb[37].mxu1 }
0x175c   :  { %3864 = shalt.err (!%p3861_p4)
}
0x175d   :  { %s3865_s30 = scalar_lea.hbm %s4618_s11, 32 }
0x175e   :  { %p3866_p5 = scmp.ne.s32.totalorder %s4618_s11, %s3865_s30  ;;  %p3869_p6 = scmp.lt.u32.totalorder %s3865_s30, %s4618_s11 }
0x1760   :  { %p3871_p7 = pnand %p3869_p6, %p3866_p5 }
0x1762   :  { %3874 = shalt.err (!%p3871_p7)
}
0x1763   :  { %2808 = dma.vmem_to_hbm [thread:$0]  %s2806_s25, 32, %s4618_s11, [#allocation3]  }
0x1764   :  { %3875 = dma.done.wait [#allocation3], 32  }
0x1765   :  { %3876 = vsyncadd [#allocation3], 4294967264 }
0x1766   :  { %2812 = vsyncpa [#allocation3], 1 }

</bundles_post_ra>
